<compile_context>
chip_gen: v7x
topology: tpu7x:2x2x1
jax: 0.10.0
libtpu: 0.0.40
codegen_flags: <defaults>
</compile_context>

<pallas_src>
import functools

import jax
import jax.numpy as jnp
from jax import lax
from jax.experimental import pallas as pl
from jax.experimental.pallas import tpu as pltpu


# ---------------------------------------------------------------------------
# Kernel
# ---------------------------------------------------------------------------
def _attn_kernel(x_ref, wq_ref, wk_ref, wv_ref, wo_ref, bo_ref, o_ref, *scratch,
                 n_groups, gsz, dh, tb, n):
    """One grid step handles TB batches = (TB*N, D) token rows.

    x_ref        : (TB*N, D)            activation block
    wq/wk/wv_ref : (n_groups, D, G*dh)  per-head-group projection weights (q pre-scaled)
    wo_ref       : (n_groups, G*dh, D)  per-group slices of the output projection
    bo_ref       : (1, D)               output bias
    scratch      : [acc (TB*N, D) f32]  only when n_groups > 1
                   og  (TB*N, G*dh)     per-group head-output staging buffer
    """
    og_ref = scratch[-1]
    acc_ref = scratch[0] if n_groups > 1 else None

    x = x_ref[...]                                   # (rows, D)
    in_dtype = x.dtype
    rows = tb * n
    bias = bo_ref[...].astype(jnp.float32)           # (1, D), broadcasts over rows

    # Small static trip counts (groups are sized so G*dh is lane-dense and n_groups is
    # typically <= ~8); Python unroll keeps the bodies visible to the LLO scheduler.
    for g in range(n_groups):
        # Lane-dense group projections: (rows, D) @ (D, G*dh).  Softmax scale is already
        # folded into wq; MXU inputs stay in the activation dtype, accumulate in f32,
        # cast back once per group so the score/PV matmuls also run at bf16 rate.
        qg = lax.dot_general(x, wq_ref[g], (((1,), (0,)), ((), ())),
                             preferred_element_type=jnp.float32).astype(in_dtype)
        kg = lax.dot_general(x, wk_ref[g], (((1,), (0,)), ((), ())),
                             preferred_element_type=jnp.float32).astype(in_dtype)
        vg = lax.dot_general(x, wv_ref[g], (((1,), (0,)), ((), ())),
                             preferred_element_type=jnp.float32).astype(in_dtype)

        for h in range(gsz):
            lo, hi = h * dh, (h + 1) * dh
            qh = qg[:, lo:hi].reshape(tb, n, dh)
            kh = kg[:, lo:hi].reshape(tb, n, dh)
            vh = vg[:, lo:hi].reshape(tb, n, dh)

            # Scores (tb, N, N): contract the last dims directly -- no explicit k.T.
            s = lax.dot_general(qh, kh, (((2,), (2,)), ((0,), (0,))),
                                preferred_element_type=jnp.float32)

            # Numerically stable softmax; reciprocal goes to the (otherwise idle) EUP slot.
            # approx=True gives ~1e-4 rel error; use approx=False for training-grade checks.
            m = jnp.max(s, axis=-1, keepdims=True)
            p = jnp.exp(s - m)
            p = p * pl.reciprocal(jnp.sum(p, axis=-1, keepdims=True), approx=True)
            # TODO(synk): dropout(p>0) on `p` would need pltpu.prng_*; dropout=0.0 -> identity.

            oh = lax.dot_general(p.astype(in_dtype), vh, (((2,), (1,)), ((0,), (0,))),
                                 preferred_element_type=jnp.float32)
            og_ref[:, lo:hi] = oh.reshape(rows, dh).astype(in_dtype)

        # Fused "concat heads + output projection" per group: contraction K = G*dh
        # (>= 128 for real ViT dims) instead of per-head K = dh.
        contrib = lax.dot_general(og_ref[...], wo_ref[g], (((1,), (0,)), ((), ())),
                                  preferred_element_type=jnp.float32)

        if n_groups == 1:
            o_ref[...] = (contrib + bias).astype(o_ref.dtype)      # fully peeled
        elif g == 0:
            acc_ref[...] = contrib + bias                          # peel: no zero-fill RMW
        elif g == n_groups - 1:
            o_ref[...] = (acc_ref[...] + contrib).astype(o_ref.dtype)
        else:
            acc_ref[...] += contrib


# ---------------------------------------------------------------------------
# Weight preparation (call once; constant-folds under jit)
# ---------------------------------------------------------------------------
def _pick_head_group(heads, dh, target=256):
    """Smallest divisor G of `heads` such that G*dh reaches the target lane width."""
    want = min(target, heads * dh)
    for cand in range(1, heads + 1):
        if heads % cand == 0 and cand * dh >= want:
            return cand
    return heads


def prepare_attention_weights(w_qkv, w_out, b_out, *, heads, dtype=None,
                              head_group=None, group_target_lanes=256):
    """Torch-layout weights -> kernel layout.

    w_qkv: (3*inner, D), w_out: (D, inner), b_out: (D,)
    Returns wq, wk, wv: (n_groups, D, G*dh)  (wq pre-scaled by dh**-0.5),
            wo: (n_groups, G*dh, D), bo: (1, D).
    """
    three_inner, D = w_qkv.shape
    inner = three_inner // 3
    dh = inner // heads
    scale = float(dh) ** -0.5
    dtype = dtype or w_qkv.dtype

    gsz = head_group or _pick_head_group(heads, dh, target=group_target_lanes)
    assert heads % gsz == 0
    n_groups = heads // gsz
    gdh = gsz * dh

    def grouped(w_rows):                     # (inner, D) -> (n_groups, D, G*dh)
        # torch rows are ordered (head-major, dh-minor); groups take contiguous heads.
        return jnp.transpose(w_rows.T.reshape(D, n_groups, gdh), (1, 0, 2))

    wq = (grouped(w_qkv[0 * inner:1 * inner]) * scale).astype(dtype)  # fold softmax scale
    wk = grouped(w_qkv[1 * inner:2 * inner]).astype(dtype)
    wv = grouped(w_qkv[2 * inner:3 * inner]).astype(dtype)
    wo = w_out.T.reshape(n_groups, gdh, D).astype(dtype)              # (n_groups, G*dh, D)
    bo = b_out.reshape(1, D).astype(dtype)
    return wq, wk, wv, wo, bo


# ---------------------------------------------------------------------------
# Block sizing (accounts for f32 intermediates; (8,128) sublane rule)
# ---------------------------------------------------------------------------
def _working_set_bytes(tb, n, d, gdh, itemsize, n_groups):
    rows = tb * n
    ws = 2 * (rows * d * itemsize) * 2          # x-in and out blocks, double-buffered
    if n_groups > 1:
        ws += rows * d * 4                      # f32 accumulator scratch
    ws += rows * gdh * itemsize                 # og staging scratch
    ws += 3 * rows * gdh * 4                    # q/k/v group intermediates (f32 pre-cast)
    ws += 2 * tb * n * n * 4                    # scores + probabilities (f32)
    return ws


def _pick_block_batch(B, n, d, gdh, itemsize, *, n_groups, min_grid_steps=1,
                      budget_bytes=8 << 20):
    divisors = [t for t in range(1, B + 1) if B % t == 0]
    # (8,128) sublane rule: the (tb*n, d) block needs tb*n % 8 == 0 unless it spans all rows.
    candidates = [t for t in divisors if (t * n) % 8 == 0 or t == B] or [B]
    fits = [t for t in candidates
            if _working_set_bytes(t, n, d, gdh, itemsize, n_groups) <= budget_bytes]
    tb = max(fits) if fits else min(candidates)
    if min_grid_steps > 1:                      # e.g. pass 4 on dual-TensorCore v7x
        split = [t for t in fits if B // t >= min_grid_steps]
        if split:
            tb = max(split)
    return tb


def _maybe_vmem_limit(block_bytes, weight_bytes):
    # Raise the scoped-VMEM limit only when needed; stay under v7x's 64 MiB physical.
    total = block_bytes + 2 * weight_bytes + (2 << 20)
    if total <= 14 * (1 << 20):
        return None
    return int(min(max(total * 3 // 2, 32 * (1 << 20)), 48 * (1 << 20)))


# ---------------------------------------------------------------------------
# Wrapper
# ---------------------------------------------------------------------------
def attention_forward(x, wq, wk, wv, wo, bo, *, heads, block_batch=None, min_grid_steps=1):
    """x: (B, N, D); weights from prepare_attention_weights. Returns (B, N, D)."""
    B, N, D = x.shape
    n_groups, d_w, gdh = wq.shape
    assert d_w == D and heads % n_groups == 0
    gsz = heads // n_groups
    dh = gdh // gsz
    inner = heads * dh
    isz = x.dtype.itemsize

    tb = block_batch or _pick_block_batch(B, N, D, gdh, isz,
                                          n_groups=n_groups, min_grid_steps=min_grid_steps)
    assert B % tb == 0
    rows = tb * N
    grid = (B // tb,)

    # Present activations as a 2-D (B*N, D) slab; row blocks align with batch-block
    # boundaries so attention never mixes batches.
    x2 = x.reshape(B * N, D)

    kernel = functools.partial(_attn_kernel, n_groups=n_groups, gsz=gsz, dh=dh, tb=tb, n=N)

    weight_bytes = (wq.size + wk.size + wv.size + wo.size + bo.size) * wq.dtype.itemsize
    flops = (2 * B * N * D * 3 * inner          # qkv projections
             + 4 * B * heads * N * N * dh       # qk^T and pv
             + 2 * B * N * inner * D)           # output projection
    transcendentals = B * heads * N * N         # exp in softmax
    bytes_accessed = 2 * B * N * D * isz + weight_bytes

    scratch = []
    if n_groups > 1:
        scratch.append(pltpu.VMEM((rows, D), jnp.float32))
    scratch.append(pltpu.VMEM((rows, gdh), x.dtype))

    vmem_limit = _maybe_vmem_limit(
        _working_set_bytes(tb, N, D, gdh, isz, n_groups), weight_bytes)

    def run(weight_mode):
        def wspec(shape):
            zeros = (0,) * len(shape)
            kwargs = {} if weight_mode is None else {"pipeline_mode": weight_mode}
            return pl.BlockSpec(shape, lambda i: zeros, **kwargs)

        cp = dict(dimension_semantics=("parallel",))
        if vmem_limit is not None:
            cp["vmem_limit_bytes"] = vmem_limit

        return pl.pallas_call(
            kernel,
            out_shape=jax.ShapeDtypeStruct((B * N, D), x.dtype),
            grid=grid,
            in_specs=[
                pl.BlockSpec((rows, D), lambda i: (i, 0)),
                # Weights use constant index maps -> resident across grid steps.
                wspec(wq.shape), wspec(wk.shape), wspec(wv.shape),
                wspec(wo.shape), wspec(bo.shape),
            ],
            out_specs=pl.BlockSpec((rows, D), lambda i: (i, 0)),
            scratch_shapes=scratch,
            compiler_params=pltpu.CompilerParams(**cp),
            cost_estimate=pl.CostEstimate(flops=flops,
                                          transcendentals=transcendentals,
                                          bytes_accessed=bytes_accessed),
        )(x2, wq, wk, wv, wo, bo)

    try:
        # Single-buffer the resident weights (constant index maps -> double-buffering
        # buys nothing and wastes VMEM, notably on v7x's 64 MiB).
        out2 = run(pl.Buffered(1))
    except Exception:   # fall back if pipeline_mode=Buffered(1) is unsupported here
        out2 = run(None)

    return out2.reshape(B, N, D)


# ---------------------------------------------------------------------------
# Pure-JAX reference (mirrors the PyTorch forward)
# ---------------------------------------------------------------------------
def _reference(x, w_qkv, w_out, b_out, *, heads):
    B, N, D = x.shape
    inner = w_qkv.shape[0] // 3
    dh = inner // heads
    qkv = x @ w_qkv.T
    q, k, v = jnp.split(qkv, 3, axis=-1)

    def split_heads(t):
        return t.reshape(B, N, heads, dh).transpose(0, 2, 1, 3)

    q, k, v = map(split_heads, (q, k, v))
    dots = jnp.einsum("bhnd,bhmd->bhnm", q, k) * (dh ** -0.5)
    attn = jax.nn.softmax(dots, axis=-1)
    out = jnp.einsum("bhnm,bhmd->bhnd", attn, v)
    out = out.transpose(0, 2, 1, 3).reshape(B, N, inner)
    return out @ w_out.T + b_out


if __name__ == "__main__":
    # Small config consistent with the module: dim=32, heads=4, dim_head=8 -> inner_dim=32.
    B, N, dim = 2, 8, 32
    heads, dim_head = 4, 8
    inner_dim = heads * dim_head

    key = jax.random.PRNGKey(0)
    kx, kq, kw, kb = jax.random.split(key, 4)
    x = jax.random.normal(kx, (B, N, dim), dtype=jnp.float32)
    w_qkv = 0.02 * jax.random.normal(kq, (inner_dim * 3, dim), dtype=jnp.float32)
    w_out = 0.02 * jax.random.normal(kw, (dim, inner_dim), dtype=jnp.float32)
    b_out = 0.02 * jax.random.normal(kb, (dim,), dtype=jnp.float32)

    # Weight prep is done once, outside the per-call hot path.
    wq, wk, wv, wo, bo = prepare_attention_weights(w_qkv, w_out, b_out, heads=heads)

    out = attention_forward(x, wq, wk, wv, wo, bo, heads=heads)
    out = jax.block_until_ready(out)

    with jax.default_matmul_precision("highest"):
        ref = _reference(x, w_qkv, w_out, b_out, heads=heads)
    ref = jax.block_until_ready(ref)

    assert out.shape == (B, N, dim)
    err = float(jnp.max(jnp.abs(out - ref)))
    assert jnp.allclose(out, ref, atol=1e-4, rtol=1e-4), f"mismatch vs reference (max abs err {err})"

    print("KERNEL_OK")
</pallas_src>

<mosaic_0001>
module attributes {stable_mosaic.version = 11 : i64} {
  func.func @_attn_kernel(%arg0: i32, %arg1: memref<16x32xf32, #tpu.memory_space<vmem>>, %arg2: memref<1x32x32xf32, #tpu.memory_space<vmem>>, %arg3: memref<1x32x32xf32, #tpu.memory_space<vmem>>, %arg4: memref<1x32x32xf32, #tpu.memory_space<vmem>>, %arg5: memref<1x32x32xf32, #tpu.memory_space<vmem>>, %arg6: memref<1x32xf32, #tpu.memory_space<vmem>>, %arg7: memref<16x32xf32, #tpu.memory_space<vmem>>, %arg8: memref<16x32xf32, #tpu.memory_space<vmem>>) attributes {dimension_semantics = [#tpu.dimension_semantics<parallel>], iteration_bounds = array<i64: 1>, scalar_prefetch = 0 : i64, scratch_operands = 1 : i64, tpu.core_type = #tpu.core_type<tc>, window_params = [{transform_indices = @transform_0, window_bounds = array<i64: 16, 32>}, {pipeline_mode = #tpu.pipeline_mode<synchronous>, transform_indices = @transform_1, window_bounds = array<i64: 1, 32, 32>}, {pipeline_mode = #tpu.pipeline_mode<synchronous>, transform_indices = @transform_2, window_bounds = array<i64: 1, 32, 32>}, {pipeline_mode = #tpu.pipeline_mode<synchronous>, transform_indices = @transform_3, window_bounds = array<i64: 1, 32, 32>}, {pipeline_mode = #tpu.pipeline_mode<synchronous>, transform_indices = @transform_4, window_bounds = array<i64: 1, 32, 32>}, {pipeline_mode = #tpu.pipeline_mode<synchronous>, transform_indices = @transform_5, window_bounds = array<i64: 1, 32>}, {transform_indices = @transform_6, window_bounds = array<i64: 16, 32>}]} {
    %c0 = arith.constant 0 : index
    %c0_0 = arith.constant 0 : index
    %0 = vector.load %arg1[%c0, %c0_0] : memref<16x32xf32, #tpu.memory_space<vmem>>, vector<16x32xf32>
    %c0_1 = arith.constant 0 : index
    %c0_2 = arith.constant 0 : index
    %1 = vector.load %arg6[%c0_1, %c0_2] : memref<1x32xf32, #tpu.memory_space<vmem>>, vector<1x32xf32>
    %c0_3 = arith.constant 0 : index
    %c0_4 = arith.constant 0 : index
    %c0_5 = arith.constant 0 : index
    %2 = vector.load %arg2[%c0_3, %c0_4, %c0_5] : memref<1x32x32xf32, #tpu.memory_space<vmem>>, vector<1x32x32xf32>
    %3 = vector.shape_cast %2 : vector<1x32x32xf32> to vector<32x32xf32>
    %cst = arith.constant dense<0.000000e+00> : vector<16x32xf32>
    %4 = tpu.matmul %0, %3, %cst {dimension_numbers = #tpu.dot_dimension_numbers<[1], [0], [0], [1], [0, 0, 1, 1], [], []>} : vector<16x32xf32>, vector<32x32xf32>, vector<16x32xf32> -> vector<16x32xf32>
    %c0_6 = arith.constant 0 : index
    %c0_7 = arith.constant 0 : index
    %c0_8 = arith.constant 0 : index
    %5 = vector.load %arg3[%c0_6, %c0_7, %c0_8] : memref<1x32x32xf32, #tpu.memory_space<vmem>>, vector<1x32x32xf32>
    %6 = vector.shape_cast %5 : vector<1x32x32xf32> to vector<32x32xf32>
    %cst_9 = arith.constant dense<0.000000e+00> : vector<16x32xf32>
    %7 = tpu.matmul %0, %6, %cst_9 {dimension_numbers = #tpu.dot_dimension_numbers<[1], [0], [0], [1], [0, 0, 1, 1], [], []>} : vector<16x32xf32>, vector<32x32xf32>, vector<16x32xf32> -> vector<16x32xf32>
    %c0_10 = arith.constant 0 : index
    %c0_11 = arith.constant 0 : index
    %c0_12 = arith.constant 0 : index
    %8 = vector.load %arg4[%c0_10, %c0_11, %c0_12] : memref<1x32x32xf32, #tpu.memory_space<vmem>>, vector<1x32x32xf32>
    %9 = vector.shape_cast %8 : vector<1x32x32xf32> to vector<32x32xf32>
    %cst_13 = arith.constant dense<0.000000e+00> : vector<16x32xf32>
    %10 = tpu.matmul %0, %9, %cst_13 {dimension_numbers = #tpu.dot_dimension_numbers<[1], [0], [0], [1], [0, 0, 1, 1], [], []>} : vector<16x32xf32>, vector<32x32xf32>, vector<16x32xf32> -> vector<16x32xf32>
    %11 = vector.extract_strided_slice %4 {offsets = [0, 0], sizes = [16, 8], strides = [1, 1]} : vector<16x32xf32> to vector<16x8xf32>
    %12 = vector.shape_cast %11 : vector<16x8xf32> to vector<2x8x8xf32>
    %13 = vector.extract_strided_slice %7 {offsets = [0, 0], sizes = [16, 8], strides = [1, 1]} : vector<16x32xf32> to vector<16x8xf32>
    %14 = vector.shape_cast %13 : vector<16x8xf32> to vector<2x8x8xf32>
    %15 = vector.extract_strided_slice %10 {offsets = [0, 0], sizes = [16, 8], strides = [1, 1]} : vector<16x32xf32> to vector<16x8xf32>
    %16 = vector.shape_cast %15 : vector<16x8xf32> to vector<2x8x8xf32>
    %cst_14 = arith.constant dense<0.000000e+00> : vector<2x8x8xf32>
    %17 = tpu.matmul %12, %14, %cst_14 {dimension_numbers = #tpu.dot_dimension_numbers<[2], [2], [1], [1], [0, 0, 0, 1, 1, 1], [0], [0]>} : vector<2x8x8xf32>, vector<2x8x8xf32>, vector<2x8x8xf32> -> vector<2x8x8xf32>
    %cst_15 = arith.constant dense<0xFF800000> : vector<2x8xf32>
    %18 = vector.multi_reduction <maximumf>, %17, %cst_15 [2] : vector<2x8x8xf32> to vector<2x8xf32>
    %19 = vector.shape_cast %18 : vector<2x8xf32> to vector<2x8x1xf32>
    %20 = vector.broadcast %19 : vector<2x8x1xf32> to vector<2x8x8xf32>
    %21 = arith.subf %17, %20 : vector<2x8x8xf32>
    %22 = math.exp %21 : vector<2x8x8xf32>
    %cst_16 = arith.constant dense<0.000000e+00> : vector<2x8xf32>
    %23 = vector.multi_reduction <add>, %22, %cst_16 [2] : vector<2x8x8xf32> to vector<2x8xf32>
    %24 = vector.shape_cast %23 : vector<2x8xf32> to vector<2x8x1xf32>
    %25 = tpu.reciprocal %24 {approx = true} : vector<2x8x1xf32> -> vector<2x8x1xf32>
    %26 = vector.broadcast %25 : vector<2x8x1xf32> to vector<2x8x8xf32>
    %27 = arith.mulf %22, %26 : vector<2x8x8xf32>
    %cst_17 = arith.constant dense<0.000000e+00> : vector<2x8x8xf32>
    %28 = tpu.matmul %27, %16, %cst_17 {dimension_numbers = #tpu.dot_dimension_numbers<[2], [1], [1], [2], [0, 0, 0, 1, 1, 2], [0], [0]>} : vector<2x8x8xf32>, vector<2x8x8xf32>, vector<2x8x8xf32> -> vector<2x8x8xf32>
    %29 = vector.shape_cast %28 : vector<2x8x8xf32> to vector<16x8xf32>
    %c0_18 = arith.constant 0 : index
    %c0_19 = arith.constant 0 : index
    %30 = vector.load %arg8[%c0_18, %c0_19] : memref<16x32xf32, #tpu.memory_space<vmem>>, vector<16x8xf32>
    tpu.vector_store %arg8[%c0_18, %c0_19], %29 {strides = array<i32>} : memref<16x32xf32, #tpu.memory_space<vmem>>, vector<16x8xf32>,
    %31 = vector.extract_strided_slice %4 {offsets = [0, 8], sizes = [16, 8], strides = [1, 1]} : vector<16x32xf32> to vector<16x8xf32>
    %32 = vector.shape_cast %31 : vector<16x8xf32> to vector<2x8x8xf32>
    %33 = vector.extract_strided_slice %7 {offsets = [0, 8], sizes = [16, 8], strides = [1, 1]} : vector<16x32xf32> to vector<16x8xf32>
    %34 = vector.shape_cast %33 : vector<16x8xf32> to vector<2x8x8xf32>
    %35 = vector.extract_strided_slice %10 {offsets = [0, 8], sizes = [16, 8], strides = [1, 1]} : vector<16x32xf32> to vector<16x8xf32>
    %36 = vector.shape_cast %35 : vector<16x8xf32> to vector<2x8x8xf32>
    %cst_20 = arith.constant dense<0.000000e+00> : vector<2x8x8xf32>
    %37 = tpu.matmul %32, %34, %cst_20 {dimension_numbers = #tpu.dot_dimension_numbers<[2], [2], [1], [1], [0, 0, 0, 1, 1, 1], [0], [0]>} : vector<2x8x8xf32>, vector<2x8x8xf32>, vector<2x8x8xf32> -> vector<2x8x8xf32>
    %cst_21 = arith.constant dense<0xFF800000> : vector<2x8xf32>
    %38 = vector.multi_reduction <maximumf>, %37, %cst_21 [2] : vector<2x8x8xf32> to vector<2x8xf32>
    %39 = vector.shape_cast %38 : vector<2x8xf32> to vector<2x8x1xf32>
    %40 = vector.broadcast %39 : vector<2x8x1xf32> to vector<2x8x8xf32>
    %41 = arith.subf %37, %40 : vector<2x8x8xf32>
    %42 = math.exp %41 : vector<2x8x8xf32>
    %cst_22 = arith.constant dense<0.000000e+00> : vector<2x8xf32>
    %43 = vector.multi_reduction <add>, %42, %cst_22 [2] : vector<2x8x8xf32> to vector<2x8xf32>
    %44 = vector.shape_cast %43 : vector<2x8xf32> to vector<2x8x1xf32>
    %45 = tpu.reciprocal %44 {approx = true} : vector<2x8x1xf32> -> vector<2x8x1xf32>
    %46 = vector.broadcast %45 : vector<2x8x1xf32> to vector<2x8x8xf32>
    %47 = arith.mulf %42, %46 : vector<2x8x8xf32>
    %cst_23 = arith.constant dense<0.000000e+00> : vector<2x8x8xf32>
    %48 = tpu.matmul %47, %36, %cst_23 {dimension_numbers = #tpu.dot_dimension_numbers<[2], [1], [1], [2], [0, 0, 0, 1, 1, 2], [0], [0]>} : vector<2x8x8xf32>, vector<2x8x8xf32>, vector<2x8x8xf32> -> vector<2x8x8xf32>
    %49 = vector.shape_cast %48 : vector<2x8x8xf32> to vector<16x8xf32>
    %c0_24 = arith.constant 0 : index
    %c8 = arith.constant 8 : index
    %50 = vector.load %arg8[%c0_24, %c8] : memref<16x32xf32, #tpu.memory_space<vmem>>, vector<16x8xf32>
    tpu.vector_store %arg8[%c0_24, %c8], %49 {strides = array<i32>} : memref<16x32xf32, #tpu.memory_space<vmem>>, vector<16x8xf32>,
    %51 = vector.extract_strided_slice %4 {offsets = [0, 16], sizes = [16, 8], strides = [1, 1]} : vector<16x32xf32> to vector<16x8xf32>
    %52 = vector.shape_cast %51 : vector<16x8xf32> to vector<2x8x8xf32>
    %53 = vector.extract_strided_slice %7 {offsets = [0, 16], sizes = [16, 8], strides = [1, 1]} : vector<16x32xf32> to vector<16x8xf32>
    %54 = vector.shape_cast %53 : vector<16x8xf32> to vector<2x8x8xf32>
    %55 = vector.extract_strided_slice %10 {offsets = [0, 16], sizes = [16, 8], strides = [1, 1]} : vector<16x32xf32> to vector<16x8xf32>
    %56 = vector.shape_cast %55 : vector<16x8xf32> to vector<2x8x8xf32>
    %cst_25 = arith.constant dense<0.000000e+00> : vector<2x8x8xf32>
    %57 = tpu.matmul %52, %54, %cst_25 {dimension_numbers = #tpu.dot_dimension_numbers<[2], [2], [1], [1], [0, 0, 0, 1, 1, 1], [0], [0]>} : vector<2x8x8xf32>, vector<2x8x8xf32>, vector<2x8x8xf32> -> vector<2x8x8xf32>
    %cst_26 = arith.constant dense<0xFF800000> : vector<2x8xf32>
    %58 = vector.multi_reduction <maximumf>, %57, %cst_26 [2] : vector<2x8x8xf32> to vector<2x8xf32>
    %59 = vector.shape_cast %58 : vector<2x8xf32> to vector<2x8x1xf32>
    %60 = vector.broadcast %59 : vector<2x8x1xf32> to vector<2x8x8xf32>
    %61 = arith.subf %57, %60 : vector<2x8x8xf32>
    %62 = math.exp %61 : vector<2x8x8xf32>
    %cst_27 = arith.constant dense<0.000000e+00> : vector<2x8xf32>
    %63 = vector.multi_reduction <add>, %62, %cst_27 [2] : vector<2x8x8xf32> to vector<2x8xf32>
    %64 = vector.shape_cast %63 : vector<2x8xf32> to vector<2x8x1xf32>
    %65 = tpu.reciprocal %64 {approx = true} : vector<2x8x1xf32> -> vector<2x8x1xf32>
    %66 = vector.broadcast %65 : vector<2x8x1xf32> to vector<2x8x8xf32>
    %67 = arith.mulf %62, %66 : vector<2x8x8xf32>
    %cst_28 = arith.constant dense<0.000000e+00> : vector<2x8x8xf32>
    %68 = tpu.matmul %67, %56, %cst_28 {dimension_numbers = #tpu.dot_dimension_numbers<[2], [1], [1], [2], [0, 0, 0, 1, 1, 2], [0], [0]>} : vector<2x8x8xf32>, vector<2x8x8xf32>, vector<2x8x8xf32> -> vector<2x8x8xf32>
    %69 = vector.shape_cast %68 : vector<2x8x8xf32> to vector<16x8xf32>
    %c0_29 = arith.constant 0 : index
    %c16 = arith.constant 16 : index
    %70 = vector.load %arg8[%c0_29, %c16] : memref<16x32xf32, #tpu.memory_space<vmem>>, vector<16x8xf32>
    tpu.vector_store %arg8[%c0_29, %c16], %69 {strides = array<i32>} : memref<16x32xf32, #tpu.memory_space<vmem>>, vector<16x8xf32>,
    %71 = vector.extract_strided_slice %4 {offsets = [0, 24], sizes = [16, 8], strides = [1, 1]} : vector<16x32xf32> to vector<16x8xf32>
    %72 = vector.shape_cast %71 : vector<16x8xf32> to vector<2x8x8xf32>
    %73 = vector.extract_strided_slice %7 {offsets = [0, 24], sizes = [16, 8], strides = [1, 1]} : vector<16x32xf32> to vector<16x8xf32>
    %74 = vector.shape_cast %73 : vector<16x8xf32> to vector<2x8x8xf32>
    %75 = vector.extract_strided_slice %10 {offsets = [0, 24], sizes = [16, 8], strides = [1, 1]} : vector<16x32xf32> to vector<16x8xf32>
    %76 = vector.shape_cast %75 : vector<16x8xf32> to vector<2x8x8xf32>
    %cst_30 = arith.constant dense<0.000000e+00> : vector<2x8x8xf32>
    %77 = tpu.matmul %72, %74, %cst_30 {dimension_numbers = #tpu.dot_dimension_numbers<[2], [2], [1], [1], [0, 0, 0, 1, 1, 1], [0], [0]>} : vector<2x8x8xf32>, vector<2x8x8xf32>, vector<2x8x8xf32> -> vector<2x8x8xf32>
    %cst_31 = arith.constant dense<0xFF800000> : vector<2x8xf32>
    %78 = vector.multi_reduction <maximumf>, %77, %cst_31 [2] : vector<2x8x8xf32> to vector<2x8xf32>
    %79 = vector.shape_cast %78 : vector<2x8xf32> to vector<2x8x1xf32>
    %80 = vector.broadcast %79 : vector<2x8x1xf32> to vector<2x8x8xf32>
    %81 = arith.subf %77, %80 : vector<2x8x8xf32>
    %82 = math.exp %81 : vector<2x8x8xf32>
    %cst_32 = arith.constant dense<0.000000e+00> : vector<2x8xf32>
    %83 = vector.multi_reduction <add>, %82, %cst_32 [2] : vector<2x8x8xf32> to vector<2x8xf32>
    %84 = vector.shape_cast %83 : vector<2x8xf32> to vector<2x8x1xf32>
    %85 = tpu.reciprocal %84 {approx = true} : vector<2x8x1xf32> -> vector<2x8x1xf32>
    %86 = vector.broadcast %85 : vector<2x8x1xf32> to vector<2x8x8xf32>
    %87 = arith.mulf %82, %86 : vector<2x8x8xf32>
    %cst_33 = arith.constant dense<0.000000e+00> : vector<2x8x8xf32>
    %88 = tpu.matmul %87, %76, %cst_33 {dimension_numbers = #tpu.dot_dimension_numbers<[2], [1], [1], [2], [0, 0, 0, 1, 1, 2], [0], [0]>} : vector<2x8x8xf32>, vector<2x8x8xf32>, vector<2x8x8xf32> -> vector<2x8x8xf32>
    %89 = vector.shape_cast %88 : vector<2x8x8xf32> to vector<16x8xf32>
    %c0_34 = arith.constant 0 : index
    %c24 = arith.constant 24 : index
    %90 = vector.load %arg8[%c0_34, %c24] : memref<16x32xf32, #tpu.memory_space<vmem>>, vector<16x8xf32>
    tpu.vector_store %arg8[%c0_34, %c24], %89 {strides = array<i32>} : memref<16x32xf32, #tpu.memory_space<vmem>>, vector<16x8xf32>,
    %c0_35 = arith.constant 0 : index
    %c0_36 = arith.constant 0 : index
    %91 = vector.load %arg8[%c0_35, %c0_36] : memref<16x32xf32, #tpu.memory_space<vmem>>, vector<16x32xf32>
    %c0_37 = arith.constant 0 : index
    %c0_38 = arith.constant 0 : index
    %c0_39 = arith.constant 0 : index
    %92 = vector.load %arg5[%c0_37, %c0_38, %c0_39] : memref<1x32x32xf32, #tpu.memory_space<vmem>>, vector<1x32x32xf32>
    %93 = vector.shape_cast %92 : vector<1x32x32xf32> to vector<32x32xf32>
    %cst_40 = arith.constant dense<0.000000e+00> : vector<16x32xf32>
    %94 = tpu.matmul %91, %93, %cst_40 {dimension_numbers = #tpu.dot_dimension_numbers<[1], [0], [0], [1], [0, 0, 1, 1], [], []>} : vector<16x32xf32>, vector<32x32xf32>, vector<16x32xf32> -> vector<16x32xf32>
    %95 = vector.broadcast %1 : vector<1x32xf32> to vector<16x32xf32>
    %96 = arith.addf %94, %95 : vector<16x32xf32>
    %c0_41 = arith.constant 0 : index
    %c0_42 = arith.constant 0 : index
    %97 = vector.load %arg7[%c0_41, %c0_42] : memref<16x32xf32, #tpu.memory_space<vmem>>, vector<16x32xf32>
    tpu.vector_store %arg7[%c0_41, %c0_42], %96 {strides = array<i32>} : memref<16x32xf32, #tpu.memory_space<vmem>>, vector<16x32xf32>,
    return
  }
  func.func @transform_0(%arg0: i32) -> (i32, i32) {
    %c0_i32 = arith.constant 0 : i32
    %c0_i32_0 = arith.constant 0 : i32
    return %arg0, %c0_i32 : i32, i32
  }
  func.func @transform_1(%arg0: i32) -> (i32, i32, i32) {
    %c0_i32 = arith.constant 0 : i32
    %c0_i32_0 = arith.constant 0 : i32
    %c0_i32_1 = arith.constant 0 : i32
    %c0_i32_2 = arith.constant 0 : i32
    return %c0_i32, %c0_i32_0, %c0_i32_1 : i32, i32, i32
  }
  func.func @transform_2(%arg0: i32) -> (i32, i32, i32) {
    %c0_i32 = arith.constant 0 : i32
    %c0_i32_0 = arith.constant 0 : i32
    %c0_i32_1 = arith.constant 0 : i32
    %c0_i32_2 = arith.constant 0 : i32
    return %c0_i32, %c0_i32_0, %c0_i32_1 : i32, i32, i32
  }
  func.func @transform_3(%arg0: i32) -> (i32, i32, i32) {
    %c0_i32 = arith.constant 0 : i32
    %c0_i32_0 = arith.constant 0 : i32
    %c0_i32_1 = arith.constant 0 : i32
    %c0_i32_2 = arith.constant 0 : i32
    return %c0_i32, %c0_i32_0, %c0_i32_1 : i32, i32, i32
  }
  func.func @transform_4(%arg0: i32) -> (i32, i32, i32) {
    %c0_i32 = arith.constant 0 : i32
    %c0_i32_0 = arith.constant 0 : i32
    %c0_i32_1 = arith.constant 0 : i32
    %c0_i32_2 = arith.constant 0 : i32
    return %c0_i32, %c0_i32_0, %c0_i32_1 : i32, i32, i32
  }
  func.func @transform_5(%arg0: i32) -> (i32, i32) {
    %c0_i32 = arith.constant 0 : i32
    %c0_i32_0 = arith.constant 0 : i32
    %c0_i32_1 = arith.constant 0 : i32
    return %c0_i32, %c0_i32_0 : i32, i32
  }
  func.func @transform_6(%arg0: i32) -> (i32, i32) {
    %c0_i32 = arith.constant 0 : i32
    %c0_i32_0 = arith.constant 0 : i32
    return %arg0, %c0_i32 : i32, i32
  }
}

module attributes {stable_mosaic.version = 11 : i64} {
  func.func @_attn_kernel(%arg0: i32, %arg1: memref<16x32xf32, #tpu.memory_space<vmem>>, %arg2: memref<1x32x32xf32, #tpu.memory_space<vmem>>, %arg3: memref<1x32x32xf32, #tpu.memory_space<vmem>>, %arg4: memref<1x32x32xf32, #tpu.memory_space<vmem>>, %arg5: memref<1x32x32xf32, #tpu.memory_space<vmem>>, %arg6: memref<1x32xf32, #tpu.memory_space<vmem>>, %arg7: memref<16x32xf32, #tpu.memory_space<vmem>>, %arg8: memref<16x32xf32, #tpu.memory_space<vmem>>) attributes {dimension_semantics = [#tpu.dimension_semantics<parallel>], iteration_bounds = array<i64: 1>, scalar_prefetch = 0 : i64, scratch_operands = 1 : i64, tpu.core_type = #tpu.core_type<tc>, window_params = [{transform_indices = @transform_0, window_bounds = array<i64: 16, 32>}, {pipeline_mode = #tpu.pipeline_mode<synchronous>, transform_indices = @transform_1, window_bounds = array<i64: 1, 32, 32>}, {pipeline_mode = #tpu.pipeline_mode<synchronous>, transform_indices = @transform_2, window_bounds = array<i64: 1, 32, 32>}, {pipeline_mode = #tpu.pipeline_mode<synchronous>, transform_indices = @transform_3, window_bounds = array<i64: 1, 32, 32>}, {pipeline_mode = #tpu.pipeline_mode<synchronous>, transform_indices = @transform_4, window_bounds = array<i64: 1, 32, 32>}, {pipeline_mode = #tpu.pipeline_mode<synchronous>, transform_indices = @transform_5, window_bounds = array<i64: 1, 32>}, {transform_indices = @transform_6, window_bounds = array<i64: 16, 32>}]} {
    %c0 = arith.constant 0 : index
    %c0_0 = arith.constant 0 : index
    %0 = vector.load %arg1[%c0, %c0_0] : memref<16x32xf32, #tpu.memory_space<vmem>>, vector<16x32xf32>
    %c0_1 = arith.constant 0 : index
    %c0_2 = arith.constant 0 : index
    %1 = vector.load %arg6[%c0_1, %c0_2] : memref<1x32xf32, #tpu.memory_space<vmem>>, vector<1x32xf32>
    %c0_3 = arith.constant 0 : index
    %c0_4 = arith.constant 0 : index
    %c0_5 = arith.constant 0 : index
    %2 = vector.load %arg2[%c0_3, %c0_4, %c0_5] : memref<1x32x32xf32, #tpu.memory_space<vmem>>, vector<1x32x32xf32>
    %3 = vector.shape_cast %2 : vector<1x32x32xf32> to vector<32x32xf32>
    %cst = arith.constant dense<0.000000e+00> : vector<16x32xf32>
    %4 = tpu.matmul %0, %3, %cst {dimension_numbers = #tpu.dot_dimension_numbers<[1], [0], [0], [1], [0, 0, 1, 1], [], []>} : vector<16x32xf32>, vector<32x32xf32>, vector<16x32xf32> -> vector<16x32xf32>
    %c0_6 = arith.constant 0 : index
    %c0_7 = arith.constant 0 : index
    %c0_8 = arith.constant 0 : index
    %5 = vector.load %arg3[%c0_6, %c0_7, %c0_8] : memref<1x32x32xf32, #tpu.memory_space<vmem>>, vector<1x32x32xf32>
    %6 = vector.shape_cast %5 : vector<1x32x32xf32> to vector<32x32xf32>
    %cst_9 = arith.constant dense<0.000000e+00> : vector<16x32xf32>
    %7 = tpu.matmul %0, %6, %cst_9 {dimension_numbers = #tpu.dot_dimension_numbers<[1], [0], [0], [1], [0, 0, 1, 1], [], []>} : vector<16x32xf32>, vector<32x32xf32>, vector<16x32xf32> -> vector<16x32xf32>
    %c0_10 = arith.constant 0 : index
    %c0_11 = arith.constant 0 : index
    %c0_12 = arith.constant 0 : index
    %8 = vector.load %arg4[%c0_10, %c0_11, %c0_12] : memref<1x32x32xf32, #tpu.memory_space<vmem>>, vector<1x32x32xf32>
    %9 = vector.shape_cast %8 : vector<1x32x32xf32> to vector<32x32xf32>
    %cst_13 = arith.constant dense<0.000000e+00> : vector<16x32xf32>
    %10 = tpu.matmul %0, %9, %cst_13 {dimension_numbers = #tpu.dot_dimension_numbers<[1], [0], [0], [1], [0, 0, 1, 1], [], []>} : vector<16x32xf32>, vector<32x32xf32>, vector<16x32xf32> -> vector<16x32xf32>
    %11 = vector.extract_strided_slice %4 {offsets = [0, 0], sizes = [16, 8], strides = [1, 1]} : vector<16x32xf32> to vector<16x8xf32>
    %12 = vector.shape_cast %11 : vector<16x8xf32> to vector<2x8x8xf32>
    %13 = vector.extract_strided_slice %7 {offsets = [0, 0], sizes = [16, 8], strides = [1, 1]} : vector<16x32xf32> to vector<16x8xf32>
    %14 = vector.shape_cast %13 : vector<16x8xf32> to vector<2x8x8xf32>
    %15 = vector.extract_strided_slice %10 {offsets = [0, 0], sizes = [16, 8], strides = [1, 1]} : vector<16x32xf32> to vector<16x8xf32>
    %16 = vector.shape_cast %15 : vector<16x8xf32> to vector<2x8x8xf32>
    %cst_14 = arith.constant dense<0.000000e+00> : vector<2x8x8xf32>
    %17 = tpu.matmul %12, %14, %cst_14 {dimension_numbers = #tpu.dot_dimension_numbers<[2], [2], [1], [1], [0, 0, 0, 1, 1, 1], [0], [0]>} : vector<2x8x8xf32>, vector<2x8x8xf32>, vector<2x8x8xf32> -> vector<2x8x8xf32>
    %cst_15 = arith.constant dense<0xFF800000> : vector<2x8xf32>
    %18 = vector.multi_reduction <maximumf>, %17, %cst_15 [2] : vector<2x8x8xf32> to vector<2x8xf32>
    %19 = vector.shape_cast %18 : vector<2x8xf32> to vector<2x8x1xf32>
    %20 = vector.broadcast %19 : vector<2x8x1xf32> to vector<2x8x8xf32>
    %21 = arith.subf %17, %20 : vector<2x8x8xf32>
    %22 = math.exp %21 : vector<2x8x8xf32>
    %cst_16 = arith.constant dense<0.000000e+00> : vector<2x8xf32>
    %23 = vector.multi_reduction <add>, %22, %cst_16 [2] : vector<2x8x8xf32> to vector<2x8xf32>
    %24 = vector.shape_cast %23 : vector<2x8xf32> to vector<2x8x1xf32>
    %25 = tpu.reciprocal %24 {approx = true} : vector<2x8x1xf32> -> vector<2x8x1xf32>
    %26 = vector.broadcast %25 : vector<2x8x1xf32> to vector<2x8x8xf32>
    %27 = arith.mulf %22, %26 : vector<2x8x8xf32>
    %cst_17 = arith.constant dense<0.000000e+00> : vector<2x8x8xf32>
    %28 = tpu.matmul %27, %16, %cst_17 {dimension_numbers = #tpu.dot_dimension_numbers<[2], [1], [1], [2], [0, 0, 0, 1, 1, 2], [0], [0]>} : vector<2x8x8xf32>, vector<2x8x8xf32>, vector<2x8x8xf32> -> vector<2x8x8xf32>
    %29 = vector.shape_cast %28 : vector<2x8x8xf32> to vector<16x8xf32>
    %c0_18 = arith.constant 0 : index
    %c0_19 = arith.constant 0 : index
    %30 = vector.load %arg8[%c0_18, %c0_19] : memref<16x32xf32, #tpu.memory_space<vmem>>, vector<16x8xf32>
    tpu.vector_store %arg8[%c0_18, %c0_19], %29 {strides = array<i32>} : memref<16x32xf32, #tpu.memory_space<vmem>>, vector<16x8xf32>,
    %31 = vector.extract_strided_slice %4 {offsets = [0, 8], sizes = [16, 8], strides = [1, 1]} : vector<16x32xf32> to vector<16x8xf32>
    %32 = vector.shape_cast %31 : vector<16x8xf32> to vector<2x8x8xf32>
    %33 = vector.extract_strided_slice %7 {offsets = [0, 8], sizes = [16, 8], strides = [1, 1]} : vector<16x32xf32> to vector<16x8xf32>
    %34 = vector.shape_cast %33 : vector<16x8xf32> to vector<2x8x8xf32>
    %35 = vector.extract_strided_slice %10 {offsets = [0, 8], sizes = [16, 8], strides = [1, 1]} : vector<16x32xf32> to vector<16x8xf32>
    %36 = vector.shape_cast %35 : vector<16x8xf32> to vector<2x8x8xf32>
    %cst_20 = arith.constant dense<0.000000e+00> : vector<2x8x8xf32>
    %37 = tpu.matmul %32, %34, %cst_20 {dimension_numbers = #tpu.dot_dimension_numbers<[2], [2], [1], [1], [0, 0, 0, 1, 1, 1], [0], [0]>} : vector<2x8x8xf32>, vector<2x8x8xf32>, vector<2x8x8xf32> -> vector<2x8x8xf32>
    %cst_21 = arith.constant dense<0xFF800000> : vector<2x8xf32>
    %38 = vector.multi_reduction <maximumf>, %37, %cst_21 [2] : vector<2x8x8xf32> to vector<2x8xf32>
    %39 = vector.shape_cast %38 : vector<2x8xf32> to vector<2x8x1xf32>
    %40 = vector.broadcast %39 : vector<2x8x1xf32> to vector<2x8x8xf32>
    %41 = arith.subf %37, %40 : vector<2x8x8xf32>
    %42 = math.exp %41 : vector<2x8x8xf32>
    %cst_22 = arith.constant dense<0.000000e+00> : vector<2x8xf32>
    %43 = vector.multi_reduction <add>, %42, %cst_22 [2] : vector<2x8x8xf32> to vector<2x8xf32>
    %44 = vector.shape_cast %43 : vector<2x8xf32> to vector<2x8x1xf32>
    %45 = tpu.reciprocal %44 {approx = true} : vector<2x8x1xf32> -> vector<2x8x1xf32>
    %46 = vector.broadcast %45 : vector<2x8x1xf32> to vector<2x8x8xf32>
    %47 = arith.mulf %42, %46 : vector<2x8x8xf32>
    %cst_23 = arith.constant dense<0.000000e+00> : vector<2x8x8xf32>
    %48 = tpu.matmul %47, %36, %cst_23 {dimension_numbers = #tpu.dot_dimension_numbers<[2], [1], [1], [2], [0, 0, 0, 1, 1, 2], [0], [0]>} : vector<2x8x8xf32>, vector<2x8x8xf32>, vector<2x8x8xf32> -> vector<2x8x8xf32>
    %49 = vector.shape_cast %48 : vector<2x8x8xf32> to vector<16x8xf32>
    %c0_24 = arith.constant 0 : index
    %c8 = arith.constant 8 : index
    %50 = vector.load %arg8[%c0_24, %c8] : memref<16x32xf32, #tpu.memory_space<vmem>>, vector<16x8xf32>
    tpu.vector_store %arg8[%c0_24, %c8], %49 {strides = array<i32>} : memref<16x32xf32, #tpu.memory_space<vmem>>, vector<16x8xf32>,
    %51 = vector.extract_strided_slice %4 {offsets = [0, 16], sizes = [16, 8], strides = [1, 1]} : vector<16x32xf32> to vector<16x8xf32>
    %52 = vector.shape_cast %51 : vector<16x8xf32> to vector<2x8x8xf32>
    %53 = vector.extract_strided_slice %7 {offsets = [0, 16], sizes = [16, 8], strides = [1, 1]} : vector<16x32xf32> to vector<16x8xf32>
    %54 = vector.shape_cast %53 : vector<16x8xf32> to vector<2x8x8xf32>
    %55 = vector.extract_strided_slice %10 {offsets = [0, 16], sizes = [16, 8], strides = [1, 1]} : vector<16x32xf32> to vector<16x8xf32>
    %56 = vector.shape_cast %55 : vector<16x8xf32> to vector<2x8x8xf32>
    %cst_25 = arith.constant dense<0.000000e+00> : vector<2x8x8xf32>
    %57 = tpu.matmul %52, %54, %cst_25 {dimension_numbers = #tpu.dot_dimension_numbers<[2], [2], [1], [1], [0, 0, 0, 1, 1, 1], [0], [0]>} : vector<2x8x8xf32>, vector<2x8x8xf32>, vector<2x8x8xf32> -> vector<2x8x8xf32>
    %cst_26 = arith.constant dense<0xFF800000> : vector<2x8xf32>
    %58 = vector.multi_reduction <maximumf>, %57, %cst_26 [2] : vector<2x8x8xf32> to vector<2x8xf32>
    %59 = vector.shape_cast %58 : vector<2x8xf32> to vector<2x8x1xf32>
    %60 = vector.broadcast %59 : vector<2x8x1xf32> to vector<2x8x8xf32>
    %61 = arith.subf %57, %60 : vector<2x8x8xf32>
    %62 = math.exp %61 : vector<2x8x8xf32>
    %cst_27 = arith.constant dense<0.000000e+00> : vector<2x8xf32>
    %63 = vector.multi_reduction <add>, %62, %cst_27 [2] : vector<2x8x8xf32> to vector<2x8xf32>
    %64 = vector.shape_cast %63 : vector<2x8xf32> to vector<2x8x1xf32>
    %65 = tpu.reciprocal %64 {approx = true} : vector<2x8x1xf32> -> vector<2x8x1xf32>
    %66 = vector.broadcast %65 : vector<2x8x1xf32> to vector<2x8x8xf32>
    %67 = arith.mulf %62, %66 : vector<2x8x8xf32>
    %cst_28 = arith.constant dense<0.000000e+00> : vector<2x8x8xf32>
    %68 = tpu.matmul %67, %56, %cst_28 {dimension_numbers = #tpu.dot_dimension_numbers<[2], [1], [1], [2], [0, 0, 0, 1, 1, 2], [0], [0]>} : vector<2x8x8xf32>, vector<2x8x8xf32>, vector<2x8x8xf32> -> vector<2x8x8xf32>
    %69 = vector.shape_cast %68 : vector<2x8x8xf32> to vector<16x8xf32>
    %c0_29 = arith.constant 0 : index
    %c16 = arith.constant 16 : index
    %70 = vector.load %arg8[%c0_29, %c16] : memref<16x32xf32, #tpu.memory_space<vmem>>, vector<16x8xf32>
    tpu.vector_store %arg8[%c0_29, %c16], %69 {strides = array<i32>} : memref<16x32xf32, #tpu.memory_space<vmem>>, vector<16x8xf32>,
    %71 = vector.extract_strided_slice %4 {offsets = [0, 24], sizes = [16, 8], strides = [1, 1]} : vector<16x32xf32> to vector<16x8xf32>
    %72 = vector.shape_cast %71 : vector<16x8xf32> to vector<2x8x8xf32>
    %73 = vector.extract_strided_slice %7 {offsets = [0, 24], sizes = [16, 8], strides = [1, 1]} : vector<16x32xf32> to vector<16x8xf32>
    %74 = vector.shape_cast %73 : vector<16x8xf32> to vector<2x8x8xf32>
    %75 = vector.extract_strided_slice %10 {offsets = [0, 24], sizes = [16, 8], strides = [1, 1]} : vector<16x32xf32> to vector<16x8xf32>
    %76 = vector.shape_cast %75 : vector<16x8xf32> to vector<2x8x8xf32>
    %cst_30 = arith.constant dense<0.000000e+00> : vector<2x8x8xf32>
    %77 = tpu.matmul %72, %74, %cst_30 {dimension_numbers = #tpu.dot_dimension_numbers<[2], [2], [1], [1], [0, 0, 0, 1, 1, 1], [0], [0]>} : vector<2x8x8xf32>, vector<2x8x8xf32>, vector<2x8x8xf32> -> vector<2x8x8xf32>
    %cst_31 = arith.constant dense<0xFF800000> : vector<2x8xf32>
    %78 = vector.multi_reduction <maximumf>, %77, %cst_31 [2] : vector<2x8x8xf32> to vector<2x8xf32>
    %79 = vector.shape_cast %78 : vector<2x8xf32> to vector<2x8x1xf32>
    %80 = vector.broadcast %79 : vector<2x8x1xf32> to vector<2x8x8xf32>
    %81 = arith.subf %77, %80 : vector<2x8x8xf32>
    %82 = math.exp %81 : vector<2x8x8xf32>
    %cst_32 = arith.constant dense<0.000000e+00> : vector<2x8xf32>
    %83 = vector.multi_reduction <add>, %82, %cst_32 [2] : vector<2x8x8xf32> to vector<2x8xf32>
    %84 = vector.shape_cast %83 : vector<2x8xf32> to vector<2x8x1xf32>
    %85 = tpu.reciprocal %84 {approx = true} : vector<2x8x1xf32> -> vector<2x8x1xf32>
    %86 = vector.broadcast %85 : vector<2x8x1xf32> to vector<2x8x8xf32>
    %87 = arith.mulf %82, %86 : vector<2x8x8xf32>
    %cst_33 = arith.constant dense<0.000000e+00> : vector<2x8x8xf32>
    %88 = tpu.matmul %87, %76, %cst_33 {dimension_numbers = #tpu.dot_dimension_numbers<[2], [1], [1], [2], [0, 0, 0, 1, 1, 2], [0], [0]>} : vector<2x8x8xf32>, vector<2x8x8xf32>, vector<2x8x8xf32> -> vector<2x8x8xf32>
    %89 = vector.shape_cast %88 : vector<2x8x8xf32> to vector<16x8xf32>
    %c0_34 = arith.constant 0 : index
    %c24 = arith.constant 24 : index
    %90 = vector.load %arg8[%c0_34, %c24] : memref<16x32xf32, #tpu.memory_space<vmem>>, vector<16x8xf32>
    tpu.vector_store %arg8[%c0_34, %c24], %89 {strides = array<i32>} : memref<16x32xf32, #tpu.memory_space<vmem>>, vector<16x8xf32>,
    %c0_35 = arith.constant 0 : index
    %c0_36 = arith.constant 0 : index
    %91 = vector.load %arg8[%c0_35, %c0_36] : memref<16x32xf32, #tpu.memory_space<vmem>>, vector<16x32xf32>
    %c0_37 = arith.constant 0 : index
    %c0_38 = arith.constant 0 : index
    %c0_39 = arith.constant 0 : index
    %92 = vector.load %arg5[%c0_37, %c0_38, %c0_39] : memref<1x32x32xf32, #tpu.memory_space<vmem>>, vector<1x32x32xf32>
    %93 = vector.shape_cast %92 : vector<1x32x32xf32> to vector<32x32xf32>
    %cst_40 = arith.constant dense<0.000000e+00> : vector<16x32xf32>
    %94 = tpu.matmul %91, %93, %cst_40 {dimension_numbers = #tpu.dot_dimension_numbers<[1], [0], [0], [1], [0, 0, 1, 1], [], []>} : vector<16x32xf32>, vector<32x32xf32>, vector<16x32xf32> -> vector<16x32xf32>
    %95 = vector.broadcast %1 : vector<1x32xf32> to vector<16x32xf32>
    %96 = arith.addf %94, %95 : vector<16x32xf32>
    %c0_41 = arith.constant 0 : index
    %c0_42 = arith.constant 0 : index
    %97 = vector.load %arg7[%c0_41, %c0_42] : memref<16x32xf32, #tpu.memory_space<vmem>>, vector<16x32xf32>
    tpu.vector_store %arg7[%c0_41, %c0_42], %96 {strides = array<i32>} : memref<16x32xf32, #tpu.memory_space<vmem>>, vector<16x32xf32>,
    return
  }
  func.func @transform_0(%arg0: i32) -> (i32, i32) {
    %c0_i32 = arith.constant 0 : i32
    %c0_i32_0 = arith.constant 0 : i32
    return %arg0, %c0_i32 : i32, i32
  }
  func.func @transform_1(%arg0: i32) -> (i32, i32, i32) {
    %c0_i32 = arith.constant 0 : i32
    %c0_i32_0 = arith.constant 0 : i32
    %c0_i32_1 = arith.constant 0 : i32
    %c0_i32_2 = arith.constant 0 : i32
    return %c0_i32, %c0_i32_0, %c0_i32_1 : i32, i32, i32
  }
  func.func @transform_2(%arg0: i32) -> (i32, i32, i32) {
    %c0_i32 = arith.constant 0 : i32
    %c0_i32_0 = arith.constant 0 : i32
    %c0_i32_1 = arith.constant 0 : i32
    %c0_i32_2 = arith.constant 0 : i32
    return %c0_i32, %c0_i32_0, %c0_i32_1 : i32, i32, i32
  }
  func.func @transform_3(%arg0: i32) -> (i32, i32, i32) {
    %c0_i32 = arith.constant 0 : i32
    %c0_i32_0 = arith.constant 0 : i32
    %c0_i32_1 = arith.constant 0 : i32
    %c0_i32_2 = arith.constant 0 : i32
    return %c0_i32, %c0_i32_0, %c0_i32_1 : i32, i32, i32
  }
  func.func @transform_4(%arg0: i32) -> (i32, i32, i32) {
    %c0_i32 = arith.constant 0 : i32
    %c0_i32_0 = arith.constant 0 : i32
    %c0_i32_1 = arith.constant 0 : i32
    %c0_i32_2 = arith.constant 0 : i32
    return %c0_i32, %c0_i32_0, %c0_i32_1 : i32, i32, i32
  }
  func.func @transform_5(%arg0: i32) -> (i32, i32) {
    %c0_i32 = arith.constant 0 : i32
    %c0_i32_0 = arith.constant 0 : i32
    %c0_i32_1 = arith.constant 0 : i32
    return %c0_i32, %c0_i32_0 : i32, i32
  }
  func.func @transform_6(%arg0: i32) -> (i32, i32) {
    %c0_i32 = arith.constant 0 : i32
    %c0_i32_0 = arith.constant 0 : i32
    return %arg0, %c0_i32 : i32, i32
  }
}

</mosaic_0001>

<bundles_post_ra>
// kernel: tpu_custom_call.1
= control target key start
LH: loop header
LB: loop body
LE: loop exit
PB: predicated region body
PF: predicated region fallthrough
CT: control target
= control target key end

     0   :  { %11 = vsyncpa [#allocation4], 0  ;;  %s2554_s0 = inlined_call_operand.hbm [shape: f32[16,32], index: 0, kind: input, shape index: {}]   ;;  %s2555_s1 = inlined_call_operand.hbm [shape: f32[1,32,32], index: 1, kind: input, shape index: {}]   ;;  %s2556_s2 = inlined_call_operand.hbm [shape: f32[1,32,32], index: 2, kind: input, shape index: {}]   ;;  %s2557_s3 = inlined_call_operand.hbm [shape: f32[1,32,32], index: 3, kind: input, shape index: {}]   ;;  %s2558_s4 = inlined_call_operand.hbm [shape: f32[1,32,32], index: 4, kind: input, shape index: {}]   ;;  %s2559_s5 = inlined_call_operand.vmem [shape: f32[1,32], index: 5, kind: input, shape index: {}]   ;;  %s2560_s6 = inlined_call_operand.hbm [shape: f32[16,32], index: 6, kind: output, shape index: {}]  }
   0x1   :  { %12 = vsyncpa [#allocation7], 0 }
   0x2   :  { %13 = vsyncpa [#allocation10], 0 }
   0x3   :  { %14 = vsyncpa [#allocation5], 0  ;;  %s2233_s21 = smov [#allocation6]   ;;  %s2234_s23 = smov [#allocation9]  }
   0x4   :  { %s32_s22 = sshll.u32 %s2233_s21, 4  ;;  %s56_s24 = sshll.u32 %s2234_s23, 4  ;;  %s33_s22 = int_to_ptr.vmem [resolvable:$true] %s32_s22  ;;  %s2283_s24 = int_to_ptr.vmem [resolvable:$true] %s56_s24 }
   0x5   :  { %s2093_s27 = scalar_lea.hbm %s2555_s1, 512 }
   0x6   :  { %p2094_p0 = scmp.ne.s32.totalorder %s2555_s1, %s2093_s27  ;;  %p2097_p1 = scmp.lt.u32.totalorder %s2093_s27, %s2555_s1 }
   0x8   :  { %p2099_p2 = pnand %p2097_p1, %p2094_p0 }
   0xa   :  { %2102 = shalt.err (!%p2099_p2)
}
   0xb   :  { %s2103_s8 = scalar_lea.vmem %s33_s22, 512  ;;  %p2108_p4 = scmp.lt.s32.totalorder %s33_s22, %s33_s22 }
   0xc   :  { %p2104_p3 = scmp.ne.s32.totalorder %s33_s22, %s2103_s8  ;;  %p2109_p5 = scmp.lt.s32.totalorder %s2103_s8, %s2103_s8 }
   0xe   :  { %p2110_p6 = por %p2109_p5, %p2108_p4 }
  0x10   :  { %p2111_p7 = pnand %p2110_p6, %p2104_p3 }
  0x12   :  { %2114 = shalt.err (!%p2111_p7)
}
  0x13   :  { %s2235_s9 = smov 128   ;;  %s2236_s10 = smov 8  }
  0x14   :  { %38 = dma.hbm_to_vmem [thread:$0]  %s2555_s1, 512, %s33_s22, [#allocation7], %s2235_s9, %s2235_s9, %s2236_s10  }
  0x15   :  { %s2115_s15 = scalar_lea.hbm %s2557_s3, 512 }
  0x16   :  { %p2116_p8 = scmp.ne.s32.totalorder %s2557_s3, %s2115_s15  ;;  %p2119_p9 = scmp.lt.u32.totalorder %s2115_s15, %s2557_s3 }
  0x18   :  { %p2121_p10 = pnand %p2119_p9, %p2116_p8 }
  0x1a   :  { %2124 = shalt.err (!%p2121_p10)
}
  0x1b   :  { %s2125_s20 = scalar_lea.vmem %s2283_s24, 512  ;;  %p2130_p12 = scmp.lt.s32.totalorder %s2283_s24, %s2283_s24 }
  0x1c   :  { %p2126_p11 = scmp.ne.s32.totalorder %s2283_s24, %s2125_s20  ;;  %p2131_p13 = scmp.lt.s32.totalorder %s2125_s20, %s2125_s20 }
  0x1e   :  { %p2132_p0 = por %p2131_p13, %p2130_p12 }
  0x20   :  { %p2133_p1 = pnand %p2132_p0, %p2126_p11 }
  0x22   :  { %2136 = shalt.err (!%p2133_p1)
}
  0x23   :  { %62 = dma.hbm_to_vmem [thread:$0]  %s2557_s3, 512, %s2283_s24, [#allocation10], %s2235_s9, %s2235_s9, %s2236_s10  }
  0x24   :  { %s2237_s22 = smov [#allocation3]   ;;  %s2238_s25 = smov [#allocation8]  }
  0x25   :  { %s20_s23 = sshll.u32 %s2237_s22, 4  ;;  %s44_s26 = sshll.u32 %s2238_s25, 4  ;;  %s21_s23 = int_to_ptr.vmem [resolvable:$true] %s20_s23  ;;  %s2320_s26 = int_to_ptr.vmem [resolvable:$true] %s44_s26 }
  0x26   :  { %s2137_s29 = scalar_lea.hbm %s2554_s0, 256 }
  0x27   :  { %p2138_p2 = scmp.ne.s32.totalorder %s2554_s0, %s2137_s29  ;;  %p2141_p3 = scmp.lt.u32.totalorder %s2137_s29, %s2554_s0 }
  0x29   :  { %p2143_p4 = pnand %p2141_p3, %p2138_p2 }
  0x2b   :  { %2146 = shalt.err (!%p2143_p4)
}
  0x2c   :  { %s2147_s3 = scalar_lea.vmem %s21_s23, 256  ;;  %p2152_p6 = scmp.lt.s32.totalorder %s21_s23, %s21_s23 }
  0x2d   :  { %p2148_p5 = scmp.ne.s32.totalorder %s21_s23, %s2147_s3  ;;  %p2153_p7 = scmp.lt.s32.totalorder %s2147_s3, %s2147_s3 }
  0x2f   :  { %p2154_p8 = por %p2153_p7, %p2152_p6 }
  0x31   :  { %p2155_p9 = pnand %p2154_p8, %p2148_p5 }
  0x33   :  { %2158 = shalt.err (!%p2155_p9)
}
  0x34   :  { %26 = dma.hbm_to_vmem [thread:$0]  %s2554_s0, 256, %s21_s23, [#allocation4], %s2235_s9, %s2235_s9, %s2236_s10  }
  0x35   :  { %s2159_s15 = scalar_lea.hbm %s2556_s2, 512 }
  0x36   :  { %p2160_p10 = scmp.ne.s32.totalorder %s2556_s2, %s2159_s15  ;;  %p2163_p11 = scmp.lt.u32.totalorder %s2159_s15, %s2556_s2 }
  0x38   :  { %p2165_p12 = pnand %p2163_p11, %p2160_p10 }
  0x3a   :  { %2168 = shalt.err (!%p2165_p12)
}
  0x3b   :  { %s2169_s20 = scalar_lea.vmem %s2320_s26, 512  ;;  %p2174_p0 = scmp.lt.s32.totalorder %s2320_s26, %s2320_s26 }
  0x3c   :  { %p2170_p13 = scmp.ne.s32.totalorder %s2320_s26, %s2169_s20  ;;  %p2175_p1 = scmp.lt.s32.totalorder %s2169_s20, %s2169_s20 }
  0x3e   :  { %p2176_p2 = por %p2175_p1, %p2174_p0 }
  0x40   :  { %p2177_p3 = pnand %p2176_p2, %p2170_p13 }
  0x42   :  { %2180 = shalt.err (!%p2177_p3)
}
  0x43   :  { %50 = dma.hbm_to_vmem [thread:$0]  %s2556_s2, 512, %s2320_s26, [#allocation7], %s2235_s9, %s2235_s9, %s2236_s10  }
  0x44   :  { %s2239_s21 = smov [#allocation11]   ;;  %s2181_s27 = scalar_lea.hbm %s2558_s4, 512 }
  0x45   :  { %s68_s22 = sshll.u32 %s2239_s21, 4  ;;  %p2182_p4 = scmp.ne.s32.totalorder %s2558_s4, %s2181_s27  ;;  %s69_s22 = int_to_ptr.vmem [resolvable:$true] %s68_s22 }
  0x46   :  { %p2185_p5 = scmp.lt.u32.totalorder %s2181_s27, %s2558_s4 }
  0x48   :  { %p2187_p6 = pnand %p2185_p5, %p2182_p4 }
  0x4a   :  { %2190 = shalt.err (!%p2187_p6)
}
  0x4b   :  { %s2191_s8 = scalar_lea.vmem %s69_s22, 512  ;;  %p2196_p8 = scmp.lt.s32.totalorder %s69_s22, %s69_s22 }
  0x4c   :  { %p2192_p7 = scmp.ne.s32.totalorder %s69_s22, %s2191_s8  ;;  %p2197_p9 = scmp.lt.s32.totalorder %s2191_s8, %s2191_s8 }
  0x4e   :  { %p2198_p10 = por %p2197_p9, %p2196_p8 }
  0x50   :  { %p2199_p11 = pnand %p2198_p10, %p2192_p7 }
  0x52   :  { %2202 = shalt.err (!%p2199_p11)
}
  0x53   :  { %74 = dma.hbm_to_vmem [thread:$0]  %s2558_s4, 512, %s69_s22, [#allocation10], %s2235_s9, %s2235_s9, %s2236_s10  }
  0x54   :  { %2225 = dma.done.wait [#allocation4], 256  }
  0x55   :  { %2226 = vsyncadd [#allocation4], 4294967040 }
  0x56   :  { %2227 = dma.done.wait [#allocation7], 1024  }
  0x57   :  { %2228 = vsyncadd [#allocation7], 4294966272 }
  0x58   :  { %2229 = dma.done.wait [#allocation10], 1024  }
  0x59   :  { %2230 = vsyncadd [#allocation10], 4294966272  ;;  %v181_v0 = vld [vmem:[#allocation8] sm:$0xff]  ;;  %v182_v1 = vld [vmem:[#allocation8 + $0x8] sm:$0xff]  ;;  %vm99_vm0 = vcmask 261120   ;;  %v2240_v14 = vmov 0.0  }
  0x5a   :  { %v95_v2 = vld [vmem:[#allocation6] sm:$0xff]  ;;  %v2022_v3 = vpack.c.bf16 %v182_v1, %v181_v0  ;;  %v96_v4 = vld [vmem:[#allocation6 + $0x8] sm:$0xff]  ;;  %v183_v5 = vld [vmem:[#allocation8 + $0x10] sm:$0xff]  ;;  %vm2241_vm1 = vmmov 0   ;;  %vm339_vm2 = vcmask 64512   ;;  %s2242_s4 = smov 120  }
  0x5b   :  { %v184_v6 = vld [vmem:[#allocation8 + $0x18] sm:$0xff]  ;;  %v2014_v7 = vpack.c.bf16 %v96_v4, %v95_v2  ;;  %v97_v9 = vld [vmem:[#allocation6 + $0x10] sm:$0xff]  ;;  %v260_v19 = vld [vmem:[#allocation9] sm:$0xff]  ;;  %s2243_s11 = smov 112   ;;  %s2244_s3 = smov 104   ;;  %vm1002_vm3 = vcmask 130112  }
  0x5c   :  { %v2026_v8 = vpack.c.bf16 %v184_v6, %v183_v5  ;;  %v98_v10 = vld [vmem:[#allocation6 + $0x18] sm:$0xff]  ;;  %v92_v11 = vld [vmem:[#allocation3] sm:$0xff]  ;;  %2023 = vmatprep.subr.bf16.mxu1 %v2022_v3  ;;  %v261_v20 = vld [vmem:[#allocation9 + $0x8] sm:$0xff]  ;;  %s2245_s24 = smov 16   ;;  %vm1343_vm4 = vcmask 195712   ;;  %s2246_s12 = smov 24  }
  0x5d   :  { %v2018_v12 = vpack.c.bf16 %v98_v10, %v97_v9  ;;  %1909 = vmatprep.mubr.msk.f32.mxu1 %vm99_vm0, %v92_v11  ;;  %2025 = vmatpush3.bf16.msra.mxu1 %v2022_v3  ;;  %v93_v13 = vld [vmem:[#allocation3 + $0x8] sm:$0xff]  ;;  %v262_v21 = vld [vmem:[#allocation9 + $0x10] sm:$0xff]  ;;  %v2030_v22 = vpack.c.bf16 %v261_v20, %v260_v19  ;;  %vm1684_vm5 = vcmask 261312   ;;  %s2247_s15 = smov [#allocation12]  }
  0x5e   :  { %2015 = vmatprep.subr.bf16.mxu0 %v2014_v7  ;;  %2027 = vmatprep.subr.bf16.mxu1 %v2026_v8  ;;  %v263_v23 = vld [vmem:[#allocation9 + $0x18] sm:$0xff]  ;;  %s1787_s16 = sshll.u32 %s2247_s15, 4  ;;  %s1788_s16 = int_to_ptr.vmem [resolvable:$true] %s1787_s16 }
  0x5f   :  { %2017 = vmatpush3.bf16.msra.mxu0 %v2014_v7  ;;  %1898 = vmatprep.mubr.msk.f32.mxu0 %vm99_vm0, %v92_v11  ;;  %v2034_v24 = vpack.c.bf16 %v263_v23, %v262_v21  ;;  %s2203_s17 = scalar_lea.vmem %s1788_s16, 256  ;;  %p2208_p13 = scmp.lt.s32.totalorder %s1788_s16, %s1788_s16 }
  0x60   :  { %2019 = vmatprep.subr.bf16.mxu0 %v2018_v12  ;;  %p2204_p12 = scmp.ne.s32.totalorder %s1788_s16, %s2203_s17  ;;  %p2209_p0 = scmp.lt.s32.totalorder %s2203_s17, %s2203_s17 }
  0x61   :  { %2029 = vmatpush3.bf16.msra.mxu1 %v2026_v8 }
  0x62   :  { %1923 = vmatprep.subr.mxu1 %v2240_v14  ;;  %p2210_p1 = por %p2209_p0, %p2208_p13 }
  0x63   :  { %2021 = vmatpush3.bf16.msra.mxu0 %v2018_v12 }
  0x64   :  { %1910 = vmatmul.mubr.msk.f32.vlgmr.msra.gmra.mrb[0].mxu1 %vm99_vm0, %v93_v13  ;;  %2031 = vmatprep.subr.bf16.mxu0 %v2030_v22  ;;  %p2211_p2 = pnand %p2210_p1, %p2204_p12 }
  0x65   :  { %1925 = vmatprep.mubr.msk.f32.mxu1 %vm2241_vm1, %v2240_v14 }
  0x66   :  { %1899 = vmatmul.mubr.msk.f32.vlgmr.msra.gmra.mrb[0].mxu0 %vm99_vm0, %v93_v13 }
  0x67   :  { %1920 = vmatprep.mubr.msk.f32.mxu0 %vm99_vm0, %v92_v11  ;;  %2033 = vmatpush3.bf16.msra.mxu0 %v2030_v22 }
  0x68   :  { %2035 = vmatprep.subr.bf16.mxu0 %v2034_v24 }
  0x6b   :  { %2037 = vmatpush3.bf16.msra.mxu0 %v2034_v24 }
  0x6c   :  { %1943 = vmatprep.subr.mxu0 %v2240_v14 }
  0x6e   :  { %1921 = vmatmul.mubr.msk.f32.vlgmr.msra.gmra.mrb[2].mxu0 %vm99_vm0, %v93_v13 }
  0x6f   :  { %1945 = vmatprep.mubr.msk.f32.mxu0 %vm2241_vm1, %v2240_v14 }
 0x137   :  { %v2380_v15 = vpop.f32.mrb[0].mxu1 }
 0x138   :  { %742 = vrot.lane.b32.xlu1 %v2380_v15, %s2242_s4  ;;  %v2384_v16 = vpop.f32.mrb[1].mxu1 }
 0x139   :  { %v2386_v17 = vpop.f32.mrb[0].mxu0  ;;  %1924 = vmatpush3.xpose.msk.msra.mxu1 %vm339_vm2, %v2384_v16 }
 0x13a   :  { %v2390_v18 = vpop.f32.mrb[1].mxu0  ;;  %1928 = vmatprep.subr.mxu1 %v2240_v14 }
 0x13c   :  { %662 = vrot.lane.b32.xlu1 %v2390_v18, %s2242_s4  ;;  %1926 = vmatmul.mubr.msk.f32.vlgmr.msra.gmra.mrb[2].mxu1 %vm339_vm2, %v2390_v18 }
 0x13d   :  { %1929 = vmatpush3.xpose.msk.msra.mxu1 %vm339_vm2, %v2380_v15  ;;  %1930 = vmatprep.mubr.msk.f32.mxu1 %vm2241_vm1, %v2240_v14 }
 0x13e   :  { %1933 = vmatprep.subr.mxu1 %v2240_v14 }
 0x140   :  { %1931 = vmatmul.mubr.msk.f32.vlgmr.msra.gmra.mrb[4].mxu1 %vm339_vm2, %v2386_v17 }
 0x141   :  { %1935 = vmatprep.mubr.msk.f32.mxu1 %vm2241_vm1, %v2240_v14  ;;  %v2423_v44 = vpop.f32.mrb[2].mxu0 }
 0x142   :  { %v2425_v45 = vpop.f32.mrb[3].mxu0 }
 0x143   :  { %1934 = vmatpush3.msra.mxu1 %v2425_v45 }
 0x144   :  { %1938 = vmatprep.subr.mxu1 %v2240_v14 }
 0x1aa   :  { %v743_v35 = vpop.permute.xlu1 %742 }
 0x1ae   :  { %v663_v39 = vpop.permute.xlu1 %662 }
 0x20f   :  { %v412_v25 = vpop.f32.mrb[2].mxu1 }
 0x210   :  { %v1927_v26 = vpop.f32.mrb[3].mxu1  ;;  %v492_v27 = vsel %vm339_vm2, %v412_v25, -inf }
 0x211   :  { %493 = vmax.xlane.f32.xlu0 %v492_v27 }
 0x213   :  { %v488_v28 = vpop.f32.mrb[4].mxu1 }
 0x214   :  { %v1932_v29 = vpop.f32.mrb[5].mxu1  ;;  %v495_v30 = vsel %vm339_vm2, %v488_v28, -inf }
 0x215   :  { %496 = vmax.xlane.f32.xlu0 %v495_v30 }
 0x22b   :  { %664 = vrot.lane.b32.xlu0 %v2384_v16, %s2242_s4 }
 0x29e   :  { %v494_v31 = vpop.xlane.xlu0 %493 }
 0x29f   :  { %v498_v32 = vsub.f32 %v412_v25, %v494_v31 }
 0x2a1   :  { %v500_v33 = vmul.f32 1.442695, %v498_v32 }
 0x2a2   :  { %v497_v34 = vpop.xlane.xlu0 %496 }
 0x2a3   :  { %2061 = vpow2.f32 %v500_v33  ;;  %v499_v36 = vsub.f32 %v488_v28, %v497_v34 }
 0x2a5   :  { %v502_v37 = vmul.f32 1.442695, %v499_v36 }
 0x2a6   :  { %v665_v38 = vpop.permute.xlu0 %664 }
 0x2a7   :  { %2063 = vpow2.f32 %v502_v37  ;;  %1944 = vmatpush3.xpose.msk.msra.mxu0 %vm339_vm2, %v665_v38 }
 0x2a8   :  { %1953 = vmatprep.subr.mxu0 %v2240_v14 }
 0x2aa   :  { %1946 = vmatmul.mubr.msk.f32.vlgmr.msra.gmra.mrb[4].mxu0 %vm339_vm2, %v663_v39 }
 0x2ab   :  { %1955 = vmatprep.mubr.msk.f32.mxu0 %vm2241_vm1, %v2240_v14 }
 0x2ad   :  { %v2062_v40 = vpop.eup %2061 }
 0x2ae   :  { %v504_v41 = vsel %vm339_vm2, %v2062_v40, 0.0 }
 0x2af   :  { %505 = vadd.xlane.f32.xlu1 %v504_v41 }
 0x2b1   :  { %v2064_v42 = vpop.eup %2063 }
 0x2b2   :  { %v507_v43 = vsel %vm339_vm2, %v2064_v42, 0.0 }
 0x2b3   :  { %508 = vadd.xlane.f32.xlu1 %v507_v43 }
 0x2c4   :  { %740 = vrot.lane.b32.xlu1 %v2386_v17, %s2242_s4 }
 0x33c   :  { %v506_v46 = vpop.xlane.xlu1 %505 }
 0x33d   :  { %2065 = vrcp.f32 %v506_v46 }
 0x340   :  { %v509_v47 = vpop.xlane.xlu1 %508 }
 0x341   :  { %2067 = vrcp.f32 %v509_v47 }
 0x344   :  { %v741_v52 = vpop.permute.xlu1 %740 }
 0x347   :  { %v2066_v48 = vpop.eup %2065 }
 0x348   :  { %v512_v49 = vmul.f32 %v2066_v48, %v2062_v40 }
 0x34a   :  { %1936 = vmatmul.mubr.msk.f32.vlgmr.msra.gmra.mrb[6].mxu1 %vm339_vm2, %v512_v49 }
 0x34b   :  { %v2068_v50 = vpop.eup %2067  ;;  %1939 = vmatpush3.msra.mxu1 %v2423_v44  ;;  %1940 = vmatprep.mubr.msk.f32.mxu1 %vm2241_vm1, %v2240_v14 }
 0x34c   :  { %v513_v51 = vmul.f32 %v2068_v50, %v2064_v42  ;;  %1948 = vmatprep.subr.mxu1 %v2240_v14 }
 0x34e   :  { %1941 = vmatmul.mubr.msk.f32.vlgmr.msra.gmra.mrb[8].mxu1 %vm339_vm2, %v513_v51 }
 0x34f   :  { %1950 = vmatprep.mubr.msk.f32.mxu1 %vm2241_vm1, %v2240_v14 }
 0x352   :  { %1949 = vmatpush3.xpose.msk.msra.mxu1 %vm339_vm2, %v743_v35 }
 0x353   :  { %1958 = vmatprep.subr.mxu1 %v2240_v14 }
 0x355   :  { %1951 = vmatmul.mubr.msk.f32.vlgmr.msra.gmra.mrb[10].mxu1 %vm339_vm2, %v741_v52 }
 0x356   :  { %1960 = vmatprep.mubr.msk.f32.mxu1 %vm2241_vm1, %v2240_v14 }
 0x37d   :  { %v736_v53 = vpop.f32.mrb[4].mxu0 }
 0x37e   :  { %v1947_v54 = vpop.f32.mrb[5].mxu0  ;;  %v818_v55 = vsel %vm339_vm2, %v736_v53, -inf }
 0x37f   :  { %819 = vmax.xlane.f32.xlu0 %v818_v55 }
 0x40c   :  { %v820_v56 = vpop.xlane.xlu0 %819 }
 0x40d   :  { %v824_v57 = vsub.f32 %v736_v53, %v820_v56 }
 0x40f   :  { %v826_v58 = vmul.f32 1.442695, %v824_v57 }
 0x411   :  { %2069 = vpow2.f32 %v826_v58 }
 0x41b   :  { %v2070_v59 = vpop.eup %2069 }
 0x41c   :  { %v830_v60 = vsel %vm339_vm2, %v2070_v59, 0.0 }
 0x41d   :  { %831 = vadd.xlane.f32.xlu0 %v830_v60  ;;  %v583_v61 = vpop.f32.mrb[6].mxu1 }
 0x41e   :  { %660 = vst.msk [vmem:[#allocation2] sm:$0xff] %vm339_vm2, %v583_v61  ;;  %v1937_v62 = vpop.f32.mrb[7].mxu1 }
 0x421   :  { %v656_v63 = vpop.f32.mrb[8].mxu1 }
 0x422   :  { %661 = vst.msk [vmem:[#allocation2 + $0x8] sm:$0xff] %vm339_vm2, %v656_v63  ;;  %v1942_v0 = vpop.f32.mrb[9].mxu1 }
 0x428   :  { %v814_v1 = vpop.f32.mrb[10].mxu1 }
 0x429   :  { %v1952_v2 = vpop.f32.mrb[11].mxu1  ;;  %v821_v3 = vsel %vm339_vm2, %v814_v1, -inf }
 0x42a   :  { %822 = vmax.xlane.f32.xlu1 %v821_v3 }
 0x433   :  { %841 = vrot.lane.b32.xlu0 %v2425_v45, %s2242_s4 }
 0x43b   :  { %918 = vrot.lane.b32.xlu1 %v2423_v44, %s2242_s4 }
 0x43f   :  { %1007 = vrot.lane.b32.xlu1 %v2384_v16, %s2243_s11 }
 0x443   :  { %1085 = vrot.lane.b32.xlu1 %v2380_v15, %s2243_s11 }
 0x447   :  { %1083 = vrot.lane.b32.xlu1 %v2386_v17, %s2243_s11 }
 0x4aa   :  { %v832_v4 = vpop.xlane.xlu0 %831 }
 0x4ab   :  { %2071 = vrcp.f32 %v832_v4 }
 0x4ae   :  { %v842_v5 = vpop.permute.xlu0 %841 }
 0x4af   :  { %1954 = vmatpush3.msra.mxu0 %v842_v5 }
 0x4b0   :  { %1963 = vmatprep.subr.mxu0 %v2240_v14 }
 0x4b5   :  { %v2072_v6 = vpop.eup %2071 }
 0x4b6   :  { %v838_v7 = vmul.f32 %v2072_v6, %v2070_v59 }
 0x4b7   :  { %v823_v8 = vpop.xlane.xlu1 %822 }
 0x4b8   :  { %v825_v9 = vsub.f32 %v814_v1, %v823_v8  ;;  %1956 = vmatmul.mubr.msk.f32.vlgmr.msra.gmra.mrb[6].mxu0 %vm339_vm2, %v838_v7 }
 0x4b9   :  { %1965 = vmatprep.mubr.msk.f32.mxu0 %vm2241_vm1, %v2240_v14 }
 0x4ba   :  { %v828_v10 = vmul.f32 1.442695, %v825_v9 }
 0x4bb   :  { %v919_v11 = vpop.permute.xlu1 %918 }
 0x4bc   :  { %2073 = vpow2.f32 %v828_v10  ;;  %1959 = vmatpush3.msra.mxu1 %v919_v11 }
 0x4bd   :  { %1968 = vmatprep.subr.mxu1 %v2240_v14 }
 0x4bf   :  { %v1008_v12 = vpop.permute.xlu1 %1007 }
 0x4c0   :  { %1964 = vmatpush3.xpose.msk.msra.mxu0 %vm339_vm2, %v1008_v12 }
 0x4c1   :  { %1973 = vmatprep.subr.mxu0 %v2240_v14 }
 0x4c3   :  { %v1086_v23 = vpop.permute.xlu1 %1085 }
 0x4c6   :  { %v2074_v13 = vpop.eup %2073 }
 0x4c7   :  { %v833_v19 = vsel %vm339_vm2, %v2074_v13, 0.0  ;;  %v1084_v25 = vpop.permute.xlu1 %1083 }
 0x4c8   :  { %834 = vadd.xlane.f32.xlu0 %v833_v19 }
 0x4de   :  { %1005 = vrot.lane.b32.xlu0 %v2390_v18, %s2243_s11 }
 0x555   :  { %v835_v20 = vpop.xlane.xlu0 %834 }
 0x556   :  { %2075 = vrcp.f32 %v835_v20 }
 0x559   :  { %v1006_v21 = vpop.permute.xlu0 %1005 }
 0x55a   :  { %1966 = vmatmul.mubr.msk.f32.vlgmr.msra.gmra.mrb[8].mxu0 %vm339_vm2, %v1006_v21 }
 0x55b   :  { %1975 = vmatprep.mubr.msk.f32.mxu0 %vm2241_vm1, %v2240_v14 }
 0x560   :  { %v2076_v22 = vpop.eup %2075 }
 0x561   :  { %v839_v24 = vmul.f32 %v2076_v22, %v2074_v13 }
 0x563   :  { %1961 = vmatmul.mubr.msk.f32.vlgmr.msra.gmra.mrb[12].mxu1 %vm339_vm2, %v839_v24 }
 0x564   :  { %1969 = vmatpush3.xpose.msk.msra.mxu1 %vm339_vm2, %v1086_v23  ;;  %1970 = vmatprep.mubr.msk.f32.mxu1 %vm2241_vm1, %v2240_v14 }
 0x565   :  { %1978 = vmatprep.subr.mxu1 %v2240_v14 }
 0x567   :  { %1971 = vmatmul.mubr.msk.f32.vlgmr.msra.gmra.mrb[14].mxu1 %vm339_vm2, %v1084_v25 }
 0x568   :  { %1980 = vmatprep.mubr.msk.f32.mxu1 %vm2241_vm1, %v2240_v14 }
 0x58b   :  { %v2478_v26 = vpop.f32.mrb[6].mxu0 }
 0x58c   :  { %v1957_v27 = vpop.f32.mrb[7].mxu0 }
 0x58d   :  { %v1689_v27 = vld [vmem:[#allocation11] sm:$0xff] }
 0x62d   :  { %v1079_v28 = vpop.f32.mrb[8].mxu0 }
 0x62e   :  { %v1967_v29 = vpop.f32.mrb[9].mxu0  ;;  %v1161_v30 = vsel %vm339_vm2, %v1079_v28, -inf }
 0x62f   :  { %1162 = vmax.xlane.f32.xlu0 %v1161_v30  ;;  %v1691_v29 = vld [vmem:[#allocation11 + $0x10] sm:$0xff]  ;;  %v1692_v30 = vld [vmem:[#allocation11 + $0x18] sm:$0xff] }
 0x636   :  { %v2481_v31 = vpop.f32.mrb[12].mxu1 }
 0x637   :  { %v1962_v32 = vpop.f32.mrb[13].mxu1 }
 0x63a   :  { %v1157_v33 = vpop.f32.mrb[14].mxu1 }
 0x63b   :  { %v1972_v34 = vpop.f32.mrb[15].mxu1  ;;  %v1164_v35 = vsel %vm339_vm2, %v1157_v33, -inf }
 0x63c   :  { %1165 = vmax.xlane.f32.xlu1 %v1164_v35 }
 0x64d   :  { %1259 = vrot.lane.b32.xlu1 %v2423_v44, %s2243_s11 }
 0x651   :  { %1348 = vrot.lane.b32.xlu1 %v2384_v16, %s2244_s3 }
 0x655   :  { %1426 = vrot.lane.b32.xlu1 %v2380_v15, %s2244_s3 }
 0x659   :  { %1424 = vrot.lane.b32.xlu1 %v2386_v17, %s2244_s3 }
 0x6bc   :  { %v1163_v36 = vpop.xlane.xlu0 %1162 }
 0x6bd   :  { %v1167_v37 = vsub.f32 %v1079_v28, %v1163_v36 }
 0x6bf   :  { %v1169_v38 = vmul.f32 1.442695, %v1167_v37 }
 0x6c1   :  { %2077 = vpow2.f32 %v1169_v38 }
 0x6c9   :  { %v1166_v39 = vpop.xlane.xlu1 %1165 }
 0x6ca   :  { %v1168_v15 = vsub.f32 %v1157_v33, %v1166_v39 }
 0x6cb   :  { %v2078_v40 = vpop.eup %2077 }
 0x6cc   :  { %v1173_v41 = vsel %vm339_vm2, %v2078_v40, 0.0  ;;  %v1171_v16 = vmul.f32 1.442695, %v1168_v15 }
 0x6cd   :  { %1174 = vadd.xlane.f32.xlu0 %v1173_v41  ;;  %v1260_v42 = vpop.permute.xlu1 %1259 }
 0x6ce   :  { %1979 = vmatpush3.msra.mxu1 %v1260_v42  ;;  %2079 = vpow2.f32 %v1171_v16 }
 0x6cf   :  { %1988 = vmatprep.subr.mxu1 %v2240_v14 }
 0x6d1   :  { %v1349_v50 = vpop.permute.xlu1 %1348 }
 0x6d5   :  { %v1427_v53 = vpop.permute.xlu1 %1426 }
 0x6d8   :  { %v2080_v17 = vpop.eup %2079 }
 0x6d9   :  { %v1176_v43 = vsel %vm339_vm2, %v2080_v17, 0.0  ;;  %v1425_v55 = vpop.permute.xlu1 %1424 }
 0x6e3   :  { %1183 = vrot.lane.b32.xlu0 %v2425_v45, %s2243_s11 }
 0x702   :  { %1177 = vadd.xlane.f32.xlu0 %v1176_v43 }
 0x718   :  { %1346 = vrot.lane.b32.xlu0 %v2390_v18, %s2244_s3 }
 0x75a   :  { %v1175_v46 = vpop.xlane.xlu0 %1174 }
 0x75b   :  { %2081 = vrcp.f32 %v1175_v46 }
 0x75e   :  { %v1184_v47 = vpop.permute.xlu0 %1183 }
 0x75f   :  { %1974 = vmatpush3.msra.mxu0 %v1184_v47 }
 0x760   :  { %1983 = vmatprep.subr.mxu0 %v2240_v14 }
 0x765   :  { %v2082_v48 = vpop.eup %2081 }
 0x766   :  { %v1181_v49 = vmul.f32 %v2082_v48, %v2078_v40  ;;  %v1831_v40 = vld [vmem:[%s2559_s5] ss:$0 sm:$0xff] }
 0x768   :  { %1976 = vmatmul.mubr.msk.f32.vlgmr.msra.gmra.mrb[10].mxu0 %vm339_vm2, %v1181_v49 }
 0x769   :  { %1984 = vmatpush3.xpose.msk.msra.mxu0 %vm339_vm2, %v1349_v50  ;;  %1985 = vmatprep.mubr.msk.f32.mxu0 %vm2241_vm1, %v2240_v14 }
 0x76a   :  { %1993 = vmatprep.subr.mxu0 %v2240_v14 }
 0x78f   :  { %v1178_v51 = vpop.xlane.xlu0 %1177 }
 0x790   :  { %2083 = vrcp.f32 %v1178_v51 }
 0x793   :  { %v1347_v18 = vpop.permute.xlu0 %1346 }
 0x794   :  { %1986 = vmatmul.mubr.msk.f32.vlgmr.msra.gmra.mrb[12].mxu0 %vm339_vm2, %v1347_v18 }
 0x795   :  { %1995 = vmatprep.mubr.msk.f32.mxu0 %vm2241_vm1, %v2240_v14 }
 0x79a   :  { %v2084_v52 = vpop.eup %2083 }
 0x79b   :  { %v1182_v54 = vmul.f32 %v2084_v52, %v2080_v17 }
 0x79d   :  { %1981 = vmatmul.mubr.msk.f32.vlgmr.msra.gmra.mrb[16].mxu1 %vm339_vm2, %v1182_v54 }
 0x79e   :  { %1989 = vmatpush3.xpose.msk.msra.mxu1 %vm339_vm2, %v1427_v53  ;;  %1990 = vmatprep.mubr.msk.f32.mxu1 %vm2241_vm1, %v2240_v14 }
 0x79f   :  { %1998 = vmatprep.subr.mxu1 %v2240_v14 }
 0x7a1   :  { %1991 = vmatmul.mubr.msk.f32.vlgmr.msra.gmra.mrb[18].mxu1 %vm339_vm2, %v1425_v55 }
 0x7a2   :  { %2000 = vmatprep.mubr.msk.f32.mxu1 %vm2241_vm1, %v2240_v14 }
 0x83b   :  { %v1255_v56 = vpop.f32.mrb[10].mxu0 }
 0x83c   :  { %v1977_v57 = vpop.f32.mrb[11].mxu0 }
 0x867   :  { %v1420_v58 = vpop.f32.mrb[12].mxu0 }
 0x868   :  { %v1987_v59 = vpop.f32.mrb[13].mxu0  ;;  %v1502_v60 = vsel %vm339_vm2, %v1420_v58, -inf }
 0x869   :  { %1503 = vmax.xlane.f32.xlu0 %v1502_v60 }
 0x870   :  { %v1331_v61 = vpop.f32.mrb[16].mxu1 }
 0x871   :  { %v1982_v62 = vpop.f32.mrb[17].mxu1 }
 0x874   :  { %v1498_v63 = vpop.f32.mrb[18].mxu1 }
 0x875   :  { %v1992_v0 = vpop.f32.mrb[19].mxu1  ;;  %v1505_v1 = vsel %vm339_vm2, %v1498_v63, -inf }
 0x876   :  { %1506 = vmax.xlane.f32.xlu1 %v1505_v1 }
 0x887   :  { %1600 = vrot.lane.b32.xlu1 %v2423_v44, %s2244_s3 }
 0x88b   :  { %996 = vrot.lane.b32.xlu1 %v2478_v26, %s2236_s10 }
 0x88f   :  { %998 = vrot.lane.b32.xlu1 %v2481_v31, %s2236_s10  ;;  %v2042_v31 = vpack.c.bf16 %v1692_v30, %v1691_v29 }
 0x893   :  { %1339 = vrot.lane.b32.xlu1 %v1331_v61, %s2245_s24 }
 0x8f6   :  { %v1504_v14 = vpop.xlane.xlu0 %1503 }
 0x8f7   :  { %v1508_v2 = vsub.f32 %v1420_v58, %v1504_v14 }
 0x8f9   :  { %v1510_v3 = vmul.f32 1.442695, %v1508_v2 }
 0x8fb   :  { %2085 = vpow2.f32 %v1510_v3 }
 0x903   :  { %v1507_v4 = vpop.xlane.xlu1 %1506 }
 0x904   :  { %v1509_v5 = vsub.f32 %v1498_v63, %v1507_v4 }
 0x905   :  { %v2086_v6 = vpop.eup %2085 }
 0x906   :  { %v1512_v7 = vmul.f32 1.442695, %v1509_v5  ;;  %v1514_v8 = vsel %vm339_vm2, %v2086_v6, 0.0 }
 0x907   :  { %1515 = vadd.xlane.f32.xlu0 %v1514_v8  ;;  %v1601_v44 = vpop.permute.xlu1 %1600 }
 0x908   :  { %2087 = vpow2.f32 %v1512_v7  ;;  %1999 = vmatpush3.msra.mxu1 %v1601_v44 }
 0x90b   :  { %v997_v9 = vpop.permute.xlu1 %996 }
 0x90c   :  { %1003 = vst.msk [vmem:[#allocation2] sm:$0xff] %vm1002_vm3, %v997_v9 }
 0x90f   :  { %v999_v10 = vpop.permute.xlu1 %998 }
 0x910   :  { %1004 = vst.msk [vmem:[#allocation2 + $0x8] sm:$0xff] %vm1002_vm3, %v999_v10 }
 0x912   :  { %v2088_v11 = vpop.eup %2087 }
 0x913   :  { %v1340_v12 = vpop.permute.xlu1 %1339  ;;  %v1517_v13 = vsel %vm339_vm2, %v2088_v11, 0.0 }
 0x914   :  { %1345 = vst.msk [vmem:[#allocation2 + $0x8] sm:$0xff] %vm1343_vm4, %v1340_v12  ;;  %1518 = vadd.xlane.f32.xlu0 %v1517_v13 }
 0x92a   :  { %1524 = vrot.lane.b32.xlu0 %v2425_v45, %s2244_s3  ;;  %v1690_v45 = vld [vmem:[#allocation11 + $0x8] sm:$0xff] }
 0x92b   :  { %v2038_v28 = vpack.c.bf16 %v1690_v45, %v1689_v27 }
 0x92e   :  { %1337 = vrot.lane.b32.xlu0 %v1255_v56, %s2245_s24 }
 0x994   :  { %v1516_v19 = vpop.xlane.xlu0 %1515 }
 0x995   :  { %2089 = vrcp.f32 %v1516_v19 }
 0x99f   :  { %v2090_v21 = vpop.eup %2089 }
 0x9a0   :  { %v1522_v22 = vmul.f32 %v2090_v21, %v2086_v6 }
 0x9a1   :  { %v1519_v20 = vpop.xlane.xlu0 %1518 }
 0x9a2   :  { %2091 = vrcp.f32 %v1519_v20 }
 0x9a5   :  { %v1525_v23 = vpop.permute.xlu0 %1524 }
 0x9a6   :  { %1994 = vmatpush3.msra.mxu0 %v1525_v23 }
 0x9a7   :  { %1996 = vmatmul.mubr.msk.f32.vlgmr.msra.gmra.mrb[14].mxu0 %vm339_vm2, %v1522_v22  ;;  %2039 = vmatprep.subr.bf16.mxu0 %v2038_v28 }
 0x9a8   :  { %2041 = vmatpush3.bf16.msra.mxu0 %v2038_v28 }
 0x9a9   :  { %v1338_v24 = vpop.permute.xlu0 %1337  ;;  %2043 = vmatprep.subr.bf16.mxu0 %v2042_v31 }
 0x9aa   :  { %1344 = vst.msk [vmem:[#allocation2] sm:$0xff] %vm1343_vm4, %v1338_v24 }
 0x9ac   :  { %v2092_v25 = vpop.eup %2091  ;;  %2045 = vmatpush3.bf16.msra.mxu0 %v2042_v31 }
 0x9ad   :  { %v1523_v26 = vmul.f32 %v2092_v25, %v2088_v11 }
 0x9af   :  { %2001 = vmatmul.mubr.msk.f32.vlgmr.msra.gmra.mrb[20].mxu1 %vm339_vm2, %v1523_v26 }
 0xa7a   :  { %v1596_v32 = vpop.f32.mrb[14].mxu0 }
 0xa7b   :  { %1678 = vrot.lane.b32.xlu0 %v1596_v32, %s2246_s12  ;;  %v1997_v33 = vpop.f32.mrb[15].mxu0 }
 0xa82   :  { %v1672_v34 = vpop.f32.mrb[20].mxu1 }
 0xa83   :  { %1680 = vrot.lane.b32.xlu1 %v1672_v34, %s2246_s12  ;;  %v2002_v35 = vpop.f32.mrb[21].mxu1 }
 0xaed   :  { %v1679_v36 = vpop.permute.xlu0 %1678 }
 0xaee   :  { %1685 = vst.msk [vmem:[#allocation2] sm:$0xff] %vm1684_vm5, %v1679_v36 }
 0xaf5   :  { %v1681_v37 = vpop.permute.xlu1 %1680  ;;  %v1687_v38 = vld [vmem:[#allocation2] sm:$0xff] }
 0xaf6   :  { %1686 = vst.msk [vmem:[#allocation2 + $0x8] sm:$0xff] %vm1684_vm5, %v1681_v37  ;;  %2011 = vmatprep.mubr.msk.f32.mxu0 %vm99_vm0, %v1687_v38 }
 0xafd   :  { %v1688_v39 = vld [vmem:[#allocation2 + $0x8] sm:$0xff] }
 0xafe   :  { %2012 = vmatmul.mubr.msk.f32.vlgmr.msra.gmra.mrb[16].mxu0 %vm99_vm0, %v1688_v39 }
 0xbd1   :  { %v2013_v41 = vpop.f32.mrb[16].mxu0 }
 0xbd2   :  { %v1777_v42 = vadd.f32 %v2013_v41, %v1831_v40  ;;  %v1771_v15 = vpop.f32.mrb[17].mxu0 }
 0xbd3   :  { %v1772_v16 = vadd.f32 %v1831_v40, %v1771_v15 }
 0xbd4   :  { %1781 = vst.msk [vmem:[#allocation12 + $0x8] sm:$0xff] %vm99_vm0, %v1777_v42 }
 0xbd5   :  { %1780 = vst.msk [vmem:[#allocation12] sm:$0xff] %vm99_vm0, %v1772_v16 }
 0xbd6   :  { %2214 = shalt.err (!%p2211_p2)
}
 0xbd7   :  { %s2215_s19 = scalar_lea.hbm %s2560_s6, 256 }
 0xbd8   :  { %p2216_p3 = scmp.ne.s32.totalorder %s2560_s6, %s2215_s19  ;;  %p2219_p4 = scmp.lt.u32.totalorder %s2215_s19, %s2560_s6 }
 0xbda   :  { %p2221_p5 = pnand %p2219_p4, %p2216_p3 }
 0xbdc   :  { %2224 = shalt.err (!%p2221_p5)
}
 0xbdd   :  { %1793 = dma.vmem_to_hbm [thread:$0]  %s1788_s16, 256, %s2560_s6, [#allocation5], %s2235_s9, %s2235_s9, %s2236_s10  }
 0xbde   :  { %2231 = dma.done.wait [#allocation5], 256  }
 0xbdf   :  { %2232 = vsyncadd [#allocation5], 4294967040 }
 0xbe0   :  { %1797 = vsyncpa [#allocation4], 1 }
 0xbe1   :  { %1798 = vsyncpa [#allocation7], 1 }
 0xbe2   :  { %1799 = vsyncpa [#allocation10], 1 }
 0xbe3   :  { %1800 = vsyncpa [#allocation5], 1 }

// kernel: tpu_custom_call.1
= control target key start
LH: loop header
LB: loop body
LE: loop exit
PB: predicated region body
PF: predicated region fallthrough
CT: control target
= control target key end

     0   :  { %11 = vsyncpa [#allocation4], 0  ;;  %s2554_s0 = inlined_call_operand.hbm [shape: f32[16,32], index: 0, kind: input, shape index: {}]   ;;  %s2555_s1 = inlined_call_operand.hbm [shape: f32[1,32,32], index: 1, kind: input, shape index: {}]   ;;  %s2556_s2 = inlined_call_operand.hbm [shape: f32[1,32,32], index: 2, kind: input, shape index: {}]   ;;  %s2557_s3 = inlined_call_operand.hbm [shape: f32[1,32,32], index: 3, kind: input, shape index: {}]   ;;  %s2558_s4 = inlined_call_operand.hbm [shape: f32[1,32,32], index: 4, kind: input, shape index: {}]   ;;  %s2559_s5 = inlined_call_operand.vmem [shape: f32[1,32], index: 5, kind: input, shape index: {}]   ;;  %s2560_s6 = inlined_call_operand.hbm [shape: f32[16,32], index: 6, kind: output, shape index: {}]  }
   0x1   :  { %12 = vsyncpa [#allocation7], 0 }
   0x2   :  { %13 = vsyncpa [#allocation10], 0 }
   0x3   :  { %14 = vsyncpa [#allocation5], 0  ;;  %s2233_s21 = smov [#allocation6]   ;;  %s2234_s23 = smov [#allocation9]  }
   0x4   :  { %s32_s22 = sshll.u32 %s2233_s21, 4  ;;  %s56_s24 = sshll.u32 %s2234_s23, 4  ;;  %s33_s22 = int_to_ptr.vmem [resolvable:$true] %s32_s22  ;;  %s2283_s24 = int_to_ptr.vmem [resolvable:$true] %s56_s24 }
   0x5   :  { %s2093_s27 = scalar_lea.hbm %s2555_s1, 512 }
   0x6   :  { %p2094_p0 = scmp.ne.s32.totalorder %s2555_s1, %s2093_s27  ;;  %p2097_p1 = scmp.lt.u32.totalorder %s2093_s27, %s2555_s1 }
   0x8   :  { %p2099_p2 = pnand %p2097_p1, %p2094_p0 }
   0xa   :  { %2102 = shalt.err (!%p2099_p2)
}
   0xb   :  { %s2103_s8 = scalar_lea.vmem %s33_s22, 512  ;;  %p2108_p4 = scmp.lt.s32.totalorder %s33_s22, %s33_s22 }
   0xc   :  { %p2104_p3 = scmp.ne.s32.totalorder %s33_s22, %s2103_s8  ;;  %p2109_p5 = scmp.lt.s32.totalorder %s2103_s8, %s2103_s8 }
   0xe   :  { %p2110_p6 = por %p2109_p5, %p2108_p4 }
  0x10   :  { %p2111_p7 = pnand %p2110_p6, %p2104_p3 }
  0x12   :  { %2114 = shalt.err (!%p2111_p7)
}
  0x13   :  { %s2235_s9 = smov 128   ;;  %s2236_s10 = smov 8  }
  0x14   :  { %38 = dma.hbm_to_vmem [thread:$0]  %s2555_s1, 512, %s33_s22, [#allocation7], %s2235_s9, %s2235_s9, %s2236_s10  }
  0x15   :  { %s2115_s15 = scalar_lea.hbm %s2557_s3, 512 }
  0x16   :  { %p2116_p8 = scmp.ne.s32.totalorder %s2557_s3, %s2115_s15  ;;  %p2119_p9 = scmp.lt.u32.totalorder %s2115_s15, %s2557_s3 }
  0x18   :  { %p2121_p10 = pnand %p2119_p9, %p2116_p8 }
  0x1a   :  { %2124 = shalt.err (!%p2121_p10)
}
  0x1b   :  { %s2125_s20 = scalar_lea.vmem %s2283_s24, 512  ;;  %p2130_p12 = scmp.lt.s32.totalorder %s2283_s24, %s2283_s24 }
  0x1c   :  { %p2126_p11 = scmp.ne.s32.totalorder %s2283_s24, %s2125_s20  ;;  %p2131_p13 = scmp.lt.s32.totalorder %s2125_s20, %s2125_s20 }
  0x1e   :  { %p2132_p0 = por %p2131_p13, %p2130_p12 }
  0x20   :  { %p2133_p1 = pnand %p2132_p0, %p2126_p11 }
  0x22   :  { %2136 = shalt.err (!%p2133_p1)
}
  0x23   :  { %62 = dma.hbm_to_vmem [thread:$0]  %s2557_s3, 512, %s2283_s24, [#allocation10], %s2235_s9, %s2235_s9, %s2236_s10  }
  0x24   :  { %s2237_s22 = smov [#allocation3]   ;;  %s2238_s25 = smov [#allocation8]  }
  0x25   :  { %s20_s23 = sshll.u32 %s2237_s22, 4  ;;  %s44_s26 = sshll.u32 %s2238_s25, 4  ;;  %s21_s23 = int_to_ptr.vmem [resolvable:$true] %s20_s23  ;;  %s2320_s26 = int_to_ptr.vmem [resolvable:$true] %s44_s26 }
  0x26   :  { %s2137_s29 = scalar_lea.hbm %s2554_s0, 256 }
  0x27   :  { %p2138_p2 = scmp.ne.s32.totalorder %s2554_s0, %s2137_s29  ;;  %p2141_p3 = scmp.lt.u32.totalorder %s2137_s29, %s2554_s0 }
  0x29   :  { %p2143_p4 = pnand %p2141_p3, %p2138_p2 }
  0x2b   :  { %2146 = shalt.err (!%p2143_p4)
}
  0x2c   :  { %s2147_s3 = scalar_lea.vmem %s21_s23, 256  ;;  %p2152_p6 = scmp.lt.s32.totalorder %s21_s23, %s21_s23 }
  0x2d   :  { %p2148_p5 = scmp.ne.s32.totalorder %s21_s23, %s2147_s3  ;;  %p2153_p7 = scmp.lt.s32.totalorder %s2147_s3, %s2147_s3 }
  0x2f   :  { %p2154_p8 = por %p2153_p7, %p2152_p6 }
  0x31   :  { %p2155_p9 = pnand %p2154_p8, %p2148_p5 }
  0x33   :  { %2158 = shalt.err (!%p2155_p9)
}
  0x34   :  { %26 = dma.hbm_to_vmem [thread:$0]  %s2554_s0, 256, %s21_s23, [#allocation4], %s2235_s9, %s2235_s9, %s2236_s10  }
  0x35   :  { %s2159_s15 = scalar_lea.hbm %s2556_s2, 512 }
  0x36   :  { %p2160_p10 = scmp.ne.s32.totalorder %s2556_s2, %s2159_s15  ;;  %p2163_p11 = scmp.lt.u32.totalorder %s2159_s15, %s2556_s2 }
  0x38   :  { %p2165_p12 = pnand %p2163_p11, %p2160_p10 }
  0x3a   :  { %2168 = shalt.err (!%p2165_p12)
}
  0x3b   :  { %s2169_s20 = scalar_lea.vmem %s2320_s26, 512  ;;  %p2174_p0 = scmp.lt.s32.totalorder %s2320_s26, %s2320_s26 }
  0x3c   :  { %p2170_p13 = scmp.ne.s32.totalorder %s2320_s26, %s2169_s20  ;;  %p2175_p1 = scmp.lt.s32.totalorder %s2169_s20, %s2169_s20 }
  0x3e   :  { %p2176_p2 = por %p2175_p1, %p2174_p0 }
  0x40   :  { %p2177_p3 = pnand %p2176_p2, %p2170_p13 }
  0x42   :  { %2180 = shalt.err (!%p2177_p3)
}
  0x43   :  { %50 = dma.hbm_to_vmem [thread:$0]  %s2556_s2, 512, %s2320_s26, [#allocation7], %s2235_s9, %s2235_s9, %s2236_s10  }
  0x44   :  { %s2239_s21 = smov [#allocation11]   ;;  %s2181_s27 = scalar_lea.hbm %s2558_s4, 512 }
  0x45   :  { %s68_s22 = sshll.u32 %s2239_s21, 4  ;;  %p2182_p4 = scmp.ne.s32.totalorder %s2558_s4, %s2181_s27  ;;  %s69_s22 = int_to_ptr.vmem [resolvable:$true] %s68_s22 }
  0x46   :  { %p2185_p5 = scmp.lt.u32.totalorder %s2181_s27, %s2558_s4 }
  0x48   :  { %p2187_p6 = pnand %p2185_p5, %p2182_p4 }
  0x4a   :  { %2190 = shalt.err (!%p2187_p6)
}
  0x4b   :  { %s2191_s8 = scalar_lea.vmem %s69_s22, 512  ;;  %p2196_p8 = scmp.lt.s32.totalorder %s69_s22, %s69_s22 }
  0x4c   :  { %p2192_p7 = scmp.ne.s32.totalorder %s69_s22, %s2191_s8  ;;  %p2197_p9 = scmp.lt.s32.totalorder %s2191_s8, %s2191_s8 }
  0x4e   :  { %p2198_p10 = por %p2197_p9, %p2196_p8 }
  0x50   :  { %p2199_p11 = pnand %p2198_p10, %p2192_p7 }
  0x52   :  { %2202 = shalt.err (!%p2199_p11)
}
  0x53   :  { %74 = dma.hbm_to_vmem [thread:$0]  %s2558_s4, 512, %s69_s22, [#allocation10], %s2235_s9, %s2235_s9, %s2236_s10  }
  0x54   :  { %2225 = dma.done.wait [#allocation4], 256  }
  0x55   :  { %2226 = vsyncadd [#allocation4], 4294967040 }
  0x56   :  { %2227 = dma.done.wait [#allocation7], 1024  }
  0x57   :  { %2228 = vsyncadd [#allocation7], 4294966272 }
  0x58   :  { %2229 = dma.done.wait [#allocation10], 1024  }
  0x59   :  { %2230 = vsyncadd [#allocation10], 4294966272  ;;  %v181_v0 = vld [vmem:[#allocation8] sm:$0xff]  ;;  %v182_v1 = vld [vmem:[#allocation8 + $0x8] sm:$0xff]  ;;  %vm99_vm0 = vcmask 261120   ;;  %v2240_v14 = vmov 0.0  }
  0x5a   :  { %v95_v2 = vld [vmem:[#allocation6] sm:$0xff]  ;;  %v2022_v3 = vpack.c.bf16 %v182_v1, %v181_v0  ;;  %v96_v4 = vld [vmem:[#allocation6 + $0x8] sm:$0xff]  ;;  %v183_v5 = vld [vmem:[#allocation8 + $0x10] sm:$0xff]  ;;  %vm2241_vm1 = vmmov 0   ;;  %vm339_vm2 = vcmask 64512   ;;  %s2242_s4 = smov 120  }
  0x5b   :  { %v184_v6 = vld [vmem:[#allocation8 + $0x18] sm:$0xff]  ;;  %v2014_v7 = vpack.c.bf16 %v96_v4, %v95_v2  ;;  %v97_v9 = vld [vmem:[#allocation6 + $0x10] sm:$0xff]  ;;  %v260_v19 = vld [vmem:[#allocation9] sm:$0xff]  ;;  %s2243_s11 = smov 112   ;;  %s2244_s3 = smov 104   ;;  %vm1002_vm3 = vcmask 130112  }
  0x5c   :  { %v2026_v8 = vpack.c.bf16 %v184_v6, %v183_v5  ;;  %v98_v10 = vld [vmem:[#allocation6 + $0x18] sm:$0xff]  ;;  %v92_v11 = vld [vmem:[#allocation3] sm:$0xff]  ;;  %2023 = vmatprep.subr.bf16.mxu1 %v2022_v3  ;;  %v261_v20 = vld [vmem:[#allocation9 + $0x8] sm:$0xff]  ;;  %s2245_s24 = smov 16   ;;  %vm1343_vm4 = vcmask 195712   ;;  %s2246_s12 = smov 24  }
  0x5d   :  { %v2018_v12 = vpack.c.bf16 %v98_v10, %v97_v9  ;;  %1909 = vmatprep.mubr.msk.f32.mxu1 %vm99_vm0, %v92_v11  ;;  %2025 = vmatpush3.bf16.msra.mxu1 %v2022_v3  ;;  %v93_v13 = vld [vmem:[#allocation3 + $0x8] sm:$0xff]  ;;  %v262_v21 = vld [vmem:[#allocation9 + $0x10] sm:$0xff]  ;;  %v2030_v22 = vpack.c.bf16 %v261_v20, %v260_v19  ;;  %vm1684_vm5 = vcmask 261312   ;;  %s2247_s15 = smov [#allocation12]  }
  0x5e   :  { %2015 = vmatprep.subr.bf16.mxu0 %v2014_v7  ;;  %2027 = vmatprep.subr.bf16.mxu1 %v2026_v8  ;;  %v263_v23 = vld [vmem:[#allocation9 + $0x18] sm:$0xff]  ;;  %s1787_s16 = sshll.u32 %s2247_s15, 4  ;;  %s1788_s16 = int_to_ptr.vmem [resolvable:$true] %s1787_s16 }
  0x5f   :  { %2017 = vmatpush3.bf16.msra.mxu0 %v2014_v7  ;;  %1898 = vmatprep.mubr.msk.f32.mxu0 %vm99_vm0, %v92_v11  ;;  %v2034_v24 = vpack.c.bf16 %v263_v23, %v262_v21  ;;  %s2203_s17 = scalar_lea.vmem %s1788_s16, 256  ;;  %p2208_p13 = scmp.lt.s32.totalorder %s1788_s16, %s1788_s16 }
  0x60   :  { %2019 = vmatprep.subr.bf16.mxu0 %v2018_v12  ;;  %p2204_p12 = scmp.ne.s32.totalorder %s1788_s16, %s2203_s17  ;;  %p2209_p0 = scmp.lt.s32.totalorder %s2203_s17, %s2203_s17 }
  0x61   :  { %2029 = vmatpush3.bf16.msra.mxu1 %v2026_v8 }
  0x62   :  { %1923 = vmatprep.subr.mxu1 %v2240_v14  ;;  %p2210_p1 = por %p2209_p0, %p2208_p13 }
  0x63   :  { %2021 = vmatpush3.bf16.msra.mxu0 %v2018_v12 }
  0x64   :  { %1910 = vmatmul.mubr.msk.f32.vlgmr.msra.gmra.mrb[0].mxu1 %vm99_vm0, %v93_v13  ;;  %2031 = vmatprep.subr.bf16.mxu0 %v2030_v22  ;;  %p2211_p2 = pnand %p2210_p1, %p2204_p12 }
  0x65   :  { %1925 = vmatprep.mubr.msk.f32.mxu1 %vm2241_vm1, %v2240_v14 }
  0x66   :  { %1899 = vmatmul.mubr.msk.f32.vlgmr.msra.gmra.mrb[0].mxu0 %vm99_vm0, %v93_v13 }
  0x67   :  { %1920 = vmatprep.mubr.msk.f32.mxu0 %vm99_vm0, %v92_v11  ;;  %2033 = vmatpush3.bf16.msra.mxu0 %v2030_v22 }
  0x68   :  { %2035 = vmatprep.subr.bf16.mxu0 %v2034_v24 }
  0x6b   :  { %2037 = vmatpush3.bf16.msra.mxu0 %v2034_v24 }
  0x6c   :  { %1943 = vmatprep.subr.mxu0 %v2240_v14 }
  0x6e   :  { %1921 = vmatmul.mubr.msk.f32.vlgmr.msra.gmra.mrb[2].mxu0 %vm99_vm0, %v93_v13 }
  0x6f   :  { %1945 = vmatprep.mubr.msk.f32.mxu0 %vm2241_vm1, %v2240_v14 }
 0x137   :  { %v2380_v15 = vpop.f32.mrb[0].mxu1 }
 0x138   :  { %742 = vrot.lane.b32.xlu1 %v2380_v15, %s2242_s4  ;;  %v2384_v16 = vpop.f32.mrb[1].mxu1 }
 0x139   :  { %v2386_v17 = vpop.f32.mrb[0].mxu0  ;;  %1924 = vmatpush3.xpose.msk.msra.mxu1 %vm339_vm2, %v2384_v16 }
 0x13a   :  { %v2390_v18 = vpop.f32.mrb[1].mxu0  ;;  %1928 = vmatprep.subr.mxu1 %v2240_v14 }
 0x13c   :  { %662 = vrot.lane.b32.xlu1 %v2390_v18, %s2242_s4  ;;  %1926 = vmatmul.mubr.msk.f32.vlgmr.msra.gmra.mrb[2].mxu1 %vm339_vm2, %v2390_v18 }
 0x13d   :  { %1929 = vmatpush3.xpose.msk.msra.mxu1 %vm339_vm2, %v2380_v15  ;;  %1930 = vmatprep.mubr.msk.f32.mxu1 %vm2241_vm1, %v2240_v14 }
 0x13e   :  { %1933 = vmatprep.subr.mxu1 %v2240_v14 }
 0x140   :  { %1931 = vmatmul.mubr.msk.f32.vlgmr.msra.gmra.mrb[4].mxu1 %vm339_vm2, %v2386_v17 }
 0x141   :  { %1935 = vmatprep.mubr.msk.f32.mxu1 %vm2241_vm1, %v2240_v14  ;;  %v2423_v44 = vpop.f32.mrb[2].mxu0 }
 0x142   :  { %v2425_v45 = vpop.f32.mrb[3].mxu0 }
 0x143   :  { %1934 = vmatpush3.msra.mxu1 %v2425_v45 }
 0x144   :  { %1938 = vmatprep.subr.mxu1 %v2240_v14 }
 0x1aa   :  { %v743_v35 = vpop.permute.xlu1 %742 }
 0x1ae   :  { %v663_v39 = vpop.permute.xlu1 %662 }
 0x20f   :  { %v412_v25 = vpop.f32.mrb[2].mxu1 }
 0x210   :  { %v1927_v26 = vpop.f32.mrb[3].mxu1  ;;  %v492_v27 = vsel %vm339_vm2, %v412_v25, -inf }
 0x211   :  { %493 = vmax.xlane.f32.xlu0 %v492_v27 }
 0x213   :  { %v488_v28 = vpop.f32.mrb[4].mxu1 }
 0x214   :  { %v1932_v29 = vpop.f32.mrb[5].mxu1  ;;  %v495_v30 = vsel %vm339_vm2, %v488_v28, -inf }
 0x215   :  { %496 = vmax.xlane.f32.xlu0 %v495_v30 }
 0x22b   :  { %664 = vrot.lane.b32.xlu0 %v2384_v16, %s2242_s4 }
 0x29e   :  { %v494_v31 = vpop.xlane.xlu0 %493 }
 0x29f   :  { %v498_v32 = vsub.f32 %v412_v25, %v494_v31 }
 0x2a1   :  { %v500_v33 = vmul.f32 1.442695, %v498_v32 }
 0x2a2   :  { %v497_v34 = vpop.xlane.xlu0 %496 }
 0x2a3   :  { %2061 = vpow2.f32 %v500_v33  ;;  %v499_v36 = vsub.f32 %v488_v28, %v497_v34 }
 0x2a5   :  { %v502_v37 = vmul.f32 1.442695, %v499_v36 }
 0x2a6   :  { %v665_v38 = vpop.permute.xlu0 %664 }
 0x2a7   :  { %2063 = vpow2.f32 %v502_v37  ;;  %1944 = vmatpush3.xpose.msk.msra.mxu0 %vm339_vm2, %v665_v38 }
 0x2a8   :  { %1953 = vmatprep.subr.mxu0 %v2240_v14 }
 0x2aa   :  { %1946 = vmatmul.mubr.msk.f32.vlgmr.msra.gmra.mrb[4].mxu0 %vm339_vm2, %v663_v39 }
 0x2ab   :  { %1955 = vmatprep.mubr.msk.f32.mxu0 %vm2241_vm1, %v2240_v14 }
 0x2ad   :  { %v2062_v40 = vpop.eup %2061 }
 0x2ae   :  { %v504_v41 = vsel %vm339_vm2, %v2062_v40, 0.0 }
 0x2af   :  { %505 = vadd.xlane.f32.xlu1 %v504_v41 }
 0x2b1   :  { %v2064_v42 = vpop.eup %2063 }
 0x2b2   :  { %v507_v43 = vsel %vm339_vm2, %v2064_v42, 0.0 }
 0x2b3   :  { %508 = vadd.xlane.f32.xlu1 %v507_v43 }
 0x2c4   :  { %740 = vrot.lane.b32.xlu1 %v2386_v17, %s2242_s4 }
 0x33c   :  { %v506_v46 = vpop.xlane.xlu1 %505 }
 0x33d   :  { %2065 = vrcp.f32 %v506_v46 }
 0x340   :  { %v509_v47 = vpop.xlane.xlu1 %508 }
 0x341   :  { %2067 = vrcp.f32 %v509_v47 }
 0x344   :  { %v741_v52 = vpop.permute.xlu1 %740 }
 0x347   :  { %v2066_v48 = vpop.eup %2065 }
 0x348   :  { %v512_v49 = vmul.f32 %v2066_v48, %v2062_v40 }
 0x34a   :  { %1936 = vmatmul.mubr.msk.f32.vlgmr.msra.gmra.mrb[6].mxu1 %vm339_vm2, %v512_v49 }
 0x34b   :  { %v2068_v50 = vpop.eup %2067  ;;  %1939 = vmatpush3.msra.mxu1 %v2423_v44  ;;  %1940 = vmatprep.mubr.msk.f32.mxu1 %vm2241_vm1, %v2240_v14 }
 0x34c   :  { %v513_v51 = vmul.f32 %v2068_v50, %v2064_v42  ;;  %1948 = vmatprep.subr.mxu1 %v2240_v14 }
 0x34e   :  { %1941 = vmatmul.mubr.msk.f32.vlgmr.msra.gmra.mrb[8].mxu1 %vm339_vm2, %v513_v51 }
 0x34f   :  { %1950 = vmatprep.mubr.msk.f32.mxu1 %vm2241_vm1, %v2240_v14 }
 0x352   :  { %1949 = vmatpush3.xpose.msk.msra.mxu1 %vm339_vm2, %v743_v35 }
 0x353   :  { %1958 = vmatprep.subr.mxu1 %v2240_v14 }
 0x355   :  { %1951 = vmatmul.mubr.msk.f32.vlgmr.msra.gmra.mrb[10].mxu1 %vm339_vm2, %v741_v52 }
 0x356   :  { %1960 = vmatprep.mubr.msk.f32.mxu1 %vm2241_vm1, %v2240_v14 }
 0x37d   :  { %v736_v53 = vpop.f32.mrb[4].mxu0 }
 0x37e   :  { %v1947_v54 = vpop.f32.mrb[5].mxu0  ;;  %v818_v55 = vsel %vm339_vm2, %v736_v53, -inf }
 0x37f   :  { %819 = vmax.xlane.f32.xlu0 %v818_v55 }
 0x40c   :  { %v820_v56 = vpop.xlane.xlu0 %819 }
 0x40d   :  { %v824_v57 = vsub.f32 %v736_v53, %v820_v56 }
 0x40f   :  { %v826_v58 = vmul.f32 1.442695, %v824_v57 }
 0x411   :  { %2069 = vpow2.f32 %v826_v58 }
 0x41b   :  { %v2070_v59 = vpop.eup %2069 }
 0x41c   :  { %v830_v60 = vsel %vm339_vm2, %v2070_v59, 0.0 }
 0x41d   :  { %831 = vadd.xlane.f32.xlu0 %v830_v60  ;;  %v583_v61 = vpop.f32.mrb[6].mxu1 }
 0x41e   :  { %660 = vst.msk [vmem:[#allocation2] sm:$0xff] %vm339_vm2, %v583_v61  ;;  %v1937_v62 = vpop.f32.mrb[7].mxu1 }
 0x421   :  { %v656_v63 = vpop.f32.mrb[8].mxu1 }
 0x422   :  { %661 = vst.msk [vmem:[#allocation2 + $0x8] sm:$0xff] %vm339_vm2, %v656_v63  ;;  %v1942_v0 = vpop.f32.mrb[9].mxu1 }
 0x428   :  { %v814_v1 = vpop.f32.mrb[10].mxu1 }
 0x429   :  { %v1952_v2 = vpop.f32.mrb[11].mxu1  ;;  %v821_v3 = vsel %vm339_vm2, %v814_v1, -inf }
 0x42a   :  { %822 = vmax.xlane.f32.xlu1 %v821_v3 }
 0x433   :  { %841 = vrot.lane.b32.xlu0 %v2425_v45, %s2242_s4 }
 0x43b   :  { %918 = vrot.lane.b32.xlu1 %v2423_v44, %s2242_s4 }
 0x43f   :  { %1007 = vrot.lane.b32.xlu1 %v2384_v16, %s2243_s11 }
 0x443   :  { %1085 = vrot.lane.b32.xlu1 %v2380_v15, %s2243_s11 }
 0x447   :  { %1083 = vrot.lane.b32.xlu1 %v2386_v17, %s2243_s11 }
 0x4aa   :  { %v832_v4 = vpop.xlane.xlu0 %831 }
 0x4ab   :  { %2071 = vrcp.f32 %v832_v4 }
 0x4ae   :  { %v842_v5 = vpop.permute.xlu0 %841 }
 0x4af   :  { %1954 = vmatpush3.msra.mxu0 %v842_v5 }
 0x4b0   :  { %1963 = vmatprep.subr.mxu0 %v2240_v14 }
 0x4b5   :  { %v2072_v6 = vpop.eup %2071 }
 0x4b6   :  { %v838_v7 = vmul.f32 %v2072_v6, %v2070_v59 }
 0x4b7   :  { %v823_v8 = vpop.xlane.xlu1 %822 }
 0x4b8   :  { %v825_v9 = vsub.f32 %v814_v1, %v823_v8  ;;  %1956 = vmatmul.mubr.msk.f32.vlgmr.msra.gmra.mrb[6].mxu0 %vm339_vm2, %v838_v7 }
 0x4b9   :  { %1965 = vmatprep.mubr.msk.f32.mxu0 %vm2241_vm1, %v2240_v14 }
 0x4ba   :  { %v828_v10 = vmul.f32 1.442695, %v825_v9 }
 0x4bb   :  { %v919_v11 = vpop.permute.xlu1 %918 }
 0x4bc   :  { %2073 = vpow2.f32 %v828_v10  ;;  %1959 = vmatpush3.msra.mxu1 %v919_v11 }
 0x4bd   :  { %1968 = vmatprep.subr.mxu1 %v2240_v14 }
 0x4bf   :  { %v1008_v12 = vpop.permute.xlu1 %1007 }
 0x4c0   :  { %1964 = vmatpush3.xpose.msk.msra.mxu0 %vm339_vm2, %v1008_v12 }
 0x4c1   :  { %1973 = vmatprep.subr.mxu0 %v2240_v14 }
 0x4c3   :  { %v1086_v23 = vpop.permute.xlu1 %1085 }
 0x4c6   :  { %v2074_v13 = vpop.eup %2073 }
 0x4c7   :  { %v833_v19 = vsel %vm339_vm2, %v2074_v13, 0.0  ;;  %v1084_v25 = vpop.permute.xlu1 %1083 }
 0x4c8   :  { %834 = vadd.xlane.f32.xlu0 %v833_v19 }
 0x4de   :  { %1005 = vrot.lane.b32.xlu0 %v2390_v18, %s2243_s11 }
 0x555   :  { %v835_v20 = vpop.xlane.xlu0 %834 }
 0x556   :  { %2075 = vrcp.f32 %v835_v20 }
 0x559   :  { %v1006_v21 = vpop.permute.xlu0 %1005 }
 0x55a   :  { %1966 = vmatmul.mubr.msk.f32.vlgmr.msra.gmra.mrb[8].mxu0 %vm339_vm2, %v1006_v21 }
 0x55b   :  { %1975 = vmatprep.mubr.msk.f32.mxu0 %vm2241_vm1, %v2240_v14 }
 0x560   :  { %v2076_v22 = vpop.eup %2075 }
 0x561   :  { %v839_v24 = vmul.f32 %v2076_v22, %v2074_v13 }
 0x563   :  { %1961 = vmatmul.mubr.msk.f32.vlgmr.msra.gmra.mrb[12].mxu1 %vm339_vm2, %v839_v24 }
 0x564   :  { %1969 = vmatpush3.xpose.msk.msra.mxu1 %vm339_vm2, %v1086_v23  ;;  %1970 = vmatprep.mubr.msk.f32.mxu1 %vm2241_vm1, %v2240_v14 }
 0x565   :  { %1978 = vmatprep.subr.mxu1 %v2240_v14 }
 0x567   :  { %1971 = vmatmul.mubr.msk.f32.vlgmr.msra.gmra.mrb[14].mxu1 %vm339_vm2, %v1084_v25 }
 0x568   :  { %1980 = vmatprep.mubr.msk.f32.mxu1 %vm2241_vm1, %v2240_v14 }
 0x58b   :  { %v2478_v26 = vpop.f32.mrb[6].mxu0 }
 0x58c   :  { %v1957_v27 = vpop.f32.mrb[7].mxu0 }
 0x58d   :  { %v1689_v27 = vld [vmem:[#allocation11] sm:$0xff] }
 0x62d   :  { %v1079_v28 = vpop.f32.mrb[8].mxu0 }
 0x62e   :  { %v1967_v29 = vpop.f32.mrb[9].mxu0  ;;  %v1161_v30 = vsel %vm339_vm2, %v1079_v28, -inf }
 0x62f   :  { %1162 = vmax.xlane.f32.xlu0 %v1161_v30  ;;  %v1691_v29 = vld [vmem:[#allocation11 + $0x10] sm:$0xff]  ;;  %v1692_v30 = vld [vmem:[#allocation11 + $0x18] sm:$0xff] }
 0x636   :  { %v2481_v31 = vpop.f32.mrb[12].mxu1 }
 0x637   :  { %v1962_v32 = vpop.f32.mrb[13].mxu1 }
 0x63a   :  { %v1157_v33 = vpop.f32.mrb[14].mxu1 }
 0x63b   :  { %v1972_v34 = vpop.f32.mrb[15].mxu1  ;;  %v1164_v35 = vsel %vm339_vm2, %v1157_v33, -inf }
 0x63c   :  { %1165 = vmax.xlane.f32.xlu1 %v1164_v35 }
 0x64d   :  { %1259 = vrot.lane.b32.xlu1 %v2423_v44, %s2243_s11 }
 0x651   :  { %1348 = vrot.lane.b32.xlu1 %v2384_v16, %s2244_s3 }
 0x655   :  { %1426 = vrot.lane.b32.xlu1 %v2380_v15, %s2244_s3 }
 0x659   :  { %1424 = vrot.lane.b32.xlu1 %v2386_v17, %s2244_s3 }
 0x6bc   :  { %v1163_v36 = vpop.xlane.xlu0 %1162 }
 0x6bd   :  { %v1167_v37 = vsub.f32 %v1079_v28, %v1163_v36 }
 0x6bf   :  { %v1169_v38 = vmul.f32 1.442695, %v1167_v37 }
 0x6c1   :  { %2077 = vpow2.f32 %v1169_v38 }
 0x6c9   :  { %v1166_v39 = vpop.xlane.xlu1 %1165 }
 0x6ca   :  { %v1168_v15 = vsub.f32 %v1157_v33, %v1166_v39 }
 0x6cb   :  { %v2078_v40 = vpop.eup %2077 }
 0x6cc   :  { %v1173_v41 = vsel %vm339_vm2, %v2078_v40, 0.0  ;;  %v1171_v16 = vmul.f32 1.442695, %v1168_v15 }
 0x6cd   :  { %1174 = vadd.xlane.f32.xlu0 %v1173_v41  ;;  %v1260_v42 = vpop.permute.xlu1 %1259 }
 0x6ce   :  { %1979 = vmatpush3.msra.mxu1 %v1260_v42  ;;  %2079 = vpow2.f32 %v1171_v16 }
 0x6cf   :  { %1988 = vmatprep.subr.mxu1 %v2240_v14 }
 0x6d1   :  { %v1349_v50 = vpop.permute.xlu1 %1348 }
 0x6d5   :  { %v1427_v53 = vpop.permute.xlu1 %1426 }
 0x6d8   :  { %v2080_v17 = vpop.eup %2079 }
 0x6d9   :  { %v1176_v43 = vsel %vm339_vm2, %v2080_v17, 0.0  ;;  %v1425_v55 = vpop.permute.xlu1 %1424 }
 0x6e3   :  { %1183 = vrot.lane.b32.xlu0 %v2425_v45, %s2243_s11 }
 0x702   :  { %1177 = vadd.xlane.f32.xlu0 %v1176_v43 }
 0x718   :  { %1346 = vrot.lane.b32.xlu0 %v2390_v18, %s2244_s3 }
 0x75a   :  { %v1175_v46 = vpop.xlane.xlu0 %1174 }
 0x75b   :  { %2081 = vrcp.f32 %v1175_v46 }
 0x75e   :  { %v1184_v47 = vpop.permute.xlu0 %1183 }
 0x75f   :  { %1974 = vmatpush3.msra.mxu0 %v1184_v47 }
 0x760   :  { %1983 = vmatprep.subr.mxu0 %v2240_v14 }
 0x765   :  { %v2082_v48 = vpop.eup %2081 }
 0x766   :  { %v1181_v49 = vmul.f32 %v2082_v48, %v2078_v40  ;;  %v1831_v40 = vld [vmem:[%s2559_s5] ss:$0 sm:$0xff] }
 0x768   :  { %1976 = vmatmul.mubr.msk.f32.vlgmr.msra.gmra.mrb[10].mxu0 %vm339_vm2, %v1181_v49 }
 0x769   :  { %1984 = vmatpush3.xpose.msk.msra.mxu0 %vm339_vm2, %v1349_v50  ;;  %1985 = vmatprep.mubr.msk.f32.mxu0 %vm2241_vm1, %v2240_v14 }
 0x76a   :  { %1993 = vmatprep.subr.mxu0 %v2240_v14 }
 0x78f   :  { %v1178_v51 = vpop.xlane.xlu0 %1177 }
 0x790   :  { %2083 = vrcp.f32 %v1178_v51 }
 0x793   :  { %v1347_v18 = vpop.permute.xlu0 %1346 }
 0x794   :  { %1986 = vmatmul.mubr.msk.f32.vlgmr.msra.gmra.mrb[12].mxu0 %vm339_vm2, %v1347_v18 }
 0x795   :  { %1995 = vmatprep.mubr.msk.f32.mxu0 %vm2241_vm1, %v2240_v14 }
 0x79a   :  { %v2084_v52 = vpop.eup %2083 }
 0x79b   :  { %v1182_v54 = vmul.f32 %v2084_v52, %v2080_v17 }
 0x79d   :  { %1981 = vmatmul.mubr.msk.f32.vlgmr.msra.gmra.mrb[16].mxu1 %vm339_vm2, %v1182_v54 }
 0x79e   :  { %1989 = vmatpush3.xpose.msk.msra.mxu1 %vm339_vm2, %v1427_v53  ;;  %1990 = vmatprep.mubr.msk.f32.mxu1 %vm2241_vm1, %v2240_v14 }
 0x79f   :  { %1998 = vmatprep.subr.mxu1 %v2240_v14 }
 0x7a1   :  { %1991 = vmatmul.mubr.msk.f32.vlgmr.msra.gmra.mrb[18].mxu1 %vm339_vm2, %v1425_v55 }
 0x7a2   :  { %2000 = vmatprep.mubr.msk.f32.mxu1 %vm2241_vm1, %v2240_v14 }
 0x83b   :  { %v1255_v56 = vpop.f32.mrb[10].mxu0 }
 0x83c   :  { %v1977_v57 = vpop.f32.mrb[11].mxu0 }
 0x867   :  { %v1420_v58 = vpop.f32.mrb[12].mxu0 }
 0x868   :  { %v1987_v59 = vpop.f32.mrb[13].mxu0  ;;  %v1502_v60 = vsel %vm339_vm2, %v1420_v58, -inf }
 0x869   :  { %1503 = vmax.xlane.f32.xlu0 %v1502_v60 }
 0x870   :  { %v1331_v61 = vpop.f32.mrb[16].mxu1 }
 0x871   :  { %v1982_v62 = vpop.f32.mrb[17].mxu1 }
 0x874   :  { %v1498_v63 = vpop.f32.mrb[18].mxu1 }
 0x875   :  { %v1992_v0 = vpop.f32.mrb[19].mxu1  ;;  %v1505_v1 = vsel %vm339_vm2, %v1498_v63, -inf }
 0x876   :  { %1506 = vmax.xlane.f32.xlu1 %v1505_v1 }
 0x887   :  { %1600 = vrot.lane.b32.xlu1 %v2423_v44, %s2244_s3 }
 0x88b   :  { %996 = vrot.lane.b32.xlu1 %v2478_v26, %s2236_s10 }
 0x88f   :  { %998 = vrot.lane.b32.xlu1 %v2481_v31, %s2236_s10  ;;  %v2042_v31 = vpack.c.bf16 %v1692_v30, %v1691_v29 }
 0x893   :  { %1339 = vrot.lane.b32.xlu1 %v1331_v61, %s2245_s24 }
 0x8f6   :  { %v1504_v14 = vpop.xlane.xlu0 %1503 }
 0x8f7   :  { %v1508_v2 = vsub.f32 %v1420_v58, %v1504_v14 }
 0x8f9   :  { %v1510_v3 = vmul.f32 1.442695, %v1508_v2 }
 0x8fb   :  { %2085 = vpow2.f32 %v1510_v3 }
 0x903   :  { %v1507_v4 = vpop.xlane.xlu1 %1506 }
 0x904   :  { %v1509_v5 = vsub.f32 %v1498_v63, %v1507_v4 }
 0x905   :  { %v2086_v6 = vpop.eup %2085 }
 0x906   :  { %v1512_v7 = vmul.f32 1.442695, %v1509_v5  ;;  %v1514_v8 = vsel %vm339_vm2, %v2086_v6, 0.0 }
 0x907   :  { %1515 = vadd.xlane.f32.xlu0 %v1514_v8  ;;  %v1601_v44 = vpop.permute.xlu1 %1600 }
 0x908   :  { %2087 = vpow2.f32 %v1512_v7  ;;  %1999 = vmatpush3.msra.mxu1 %v1601_v44 }
 0x90b   :  { %v997_v9 = vpop.permute.xlu1 %996 }
 0x90c   :  { %1003 = vst.msk [vmem:[#allocation2] sm:$0xff] %vm1002_vm3, %v997_v9 }
 0x90f   :  { %v999_v10 = vpop.permute.xlu1 %998 }
 0x910   :  { %1004 = vst.msk [vmem:[#allocation2 + $0x8] sm:$0xff] %vm1002_vm3, %v999_v10 }
 0x912   :  { %v2088_v11 = vpop.eup %2087 }
 0x913   :  { %v1340_v12 = vpop.permute.xlu1 %1339  ;;  %v1517_v13 = vsel %vm339_vm2, %v2088_v11, 0.0 }
 0x914   :  { %1345 = vst.msk [vmem:[#allocation2 + $0x8] sm:$0xff] %vm1343_vm4, %v1340_v12  ;;  %1518 = vadd.xlane.f32.xlu0 %v1517_v13 }
 0x92a   :  { %1524 = vrot.lane.b32.xlu0 %v2425_v45, %s2244_s3  ;;  %v1690_v45 = vld [vmem:[#allocation11 + $0x8] sm:$0xff] }
 0x92b   :  { %v2038_v28 = vpack.c.bf16 %v1690_v45, %v1689_v27 }
 0x92e   :  { %1337 = vrot.lane.b32.xlu0 %v1255_v56, %s2245_s24 }
 0x994   :  { %v1516_v19 = vpop.xlane.xlu0 %1515 }
 0x995   :  { %2089 = vrcp.f32 %v1516_v19 }
 0x99f   :  { %v2090_v21 = vpop.eup %2089 }
 0x9a0   :  { %v1522_v22 = vmul.f32 %v2090_v21, %v2086_v6 }
 0x9a1   :  { %v1519_v20 = vpop.xlane.xlu0 %1518 }
 0x9a2   :  { %2091 = vrcp.f32 %v1519_v20 }
 0x9a5   :  { %v1525_v23 = vpop.permute.xlu0 %1524 }
 0x9a6   :  { %1994 = vmatpush3.msra.mxu0 %v1525_v23 }
 0x9a7   :  { %1996 = vmatmul.mubr.msk.f32.vlgmr.msra.gmra.mrb[14].mxu0 %vm339_vm2, %v1522_v22  ;;  %2039 = vmatprep.subr.bf16.mxu0 %v2038_v28 }
 0x9a8   :  { %2041 = vmatpush3.bf16.msra.mxu0 %v2038_v28 }
 0x9a9   :  { %v1338_v24 = vpop.permute.xlu0 %1337  ;;  %2043 = vmatprep.subr.bf16.mxu0 %v2042_v31 }
 0x9aa   :  { %1344 = vst.msk [vmem:[#allocation2] sm:$0xff] %vm1343_vm4, %v1338_v24 }
 0x9ac   :  { %v2092_v25 = vpop.eup %2091  ;;  %2045 = vmatpush3.bf16.msra.mxu0 %v2042_v31 }
 0x9ad   :  { %v1523_v26 = vmul.f32 %v2092_v25, %v2088_v11 }
 0x9af   :  { %2001 = vmatmul.mubr.msk.f32.vlgmr.msra.gmra.mrb[20].mxu1 %vm339_vm2, %v1523_v26 }
 0xa7a   :  { %v1596_v32 = vpop.f32.mrb[14].mxu0 }
 0xa7b   :  { %1678 = vrot.lane.b32.xlu0 %v1596_v32, %s2246_s12  ;;  %v1997_v33 = vpop.f32.mrb[15].mxu0 }
 0xa82   :  { %v1672_v34 = vpop.f32.mrb[20].mxu1 }
 0xa83   :  { %1680 = vrot.lane.b32.xlu1 %v1672_v34, %s2246_s12  ;;  %v2002_v35 = vpop.f32.mrb[21].mxu1 }
 0xaed   :  { %v1679_v36 = vpop.permute.xlu0 %1678 }
 0xaee   :  { %1685 = vst.msk [vmem:[#allocation2] sm:$0xff] %vm1684_vm5, %v1679_v36 }
 0xaf5   :  { %v1681_v37 = vpop.permute.xlu1 %1680  ;;  %v1687_v38 = vld [vmem:[#allocation2] sm:$0xff] }
 0xaf6   :  { %1686 = vst.msk [vmem:[#allocation2 + $0x8] sm:$0xff] %vm1684_vm5, %v1681_v37  ;;  %2011 = vmatprep.mubr.msk.f32.mxu0 %vm99_vm0, %v1687_v38 }
 0xafd   :  { %v1688_v39 = vld [vmem:[#allocation2 + $0x8] sm:$0xff] }
 0xafe   :  { %2012 = vmatmul.mubr.msk.f32.vlgmr.msra.gmra.mrb[16].mxu0 %vm99_vm0, %v1688_v39 }
 0xbd1   :  { %v2013_v41 = vpop.f32.mrb[16].mxu0 }
 0xbd2   :  { %v1777_v42 = vadd.f32 %v2013_v41, %v1831_v40  ;;  %v1771_v15 = vpop.f32.mrb[17].mxu0 }
 0xbd3   :  { %v1772_v16 = vadd.f32 %v1831_v40, %v1771_v15 }
 0xbd4   :  { %1781 = vst.msk [vmem:[#allocation12 + $0x8] sm:$0xff] %vm99_vm0, %v1777_v42 }
 0xbd5   :  { %1780 = vst.msk [vmem:[#allocation12] sm:$0xff] %vm99_vm0, %v1772_v16 }
 0xbd6   :  { %2214 = shalt.err (!%p2211_p2)
}
 0xbd7   :  { %s2215_s19 = scalar_lea.hbm %s2560_s6, 256 }
 0xbd8   :  { %p2216_p3 = scmp.ne.s32.totalorder %s2560_s6, %s2215_s19  ;;  %p2219_p4 = scmp.lt.u32.totalorder %s2215_s19, %s2560_s6 }
 0xbda   :  { %p2221_p5 = pnand %p2219_p4, %p2216_p3 }
 0xbdc   :  { %2224 = shalt.err (!%p2221_p5)
}
 0xbdd   :  { %1793 = dma.vmem_to_hbm [thread:$0]  %s1788_s16, 256, %s2560_s6, [#allocation5], %s2235_s9, %s2235_s9, %s2236_s10  }
 0xbde   :  { %2231 = dma.done.wait [#allocation5], 256  }
 0xbdf   :  { %2232 = vsyncadd [#allocation5], 4294967040 }
 0xbe0   :  { %1797 = vsyncpa [#allocation4], 1 }
 0xbe1   :  { %1798 = vsyncpa [#allocation7], 1 }
 0xbe2   :  { %1799 = vsyncpa [#allocation10], 1 }
 0xbe3   :  { %1800 = vsyncpa [#allocation5], 1 }

</bundles_post_ra>
